<compile_context>
chip_gen: v6e
topology: v6e:2x2x1
jax: 0.10.0
libtpu: 0.0.40
codegen_flags: <defaults>
</compile_context>

<pallas_src>
import functools

import jax
import jax.numpy as jnp
from jax.experimental import pallas as pl
from jax.experimental.pallas import tpu as pltpu


_VMEM_LIMIT = 48 * 1024 * 1024  # cap only; actual footprint is a few MB (safe on v5e/v6e/v7x)


def _round_up(x, m):
    return ((x + m - 1) // m) * m


def _row_tile(rows, max_tile=2048):
    """Largest multiple of 8 that divides `rows` (itself a multiple of 8) and <= max_tile."""
    t = min(max_tile, rows)
    t -= t % 8
    while t > 8 and rows % t != 0:
        t -= 8
    return max(t, 8)


# ----------------------------------------------------------------------------
# Kernel 1: merged dual-stream conv stem (im2col matmul) + ReLU + global-avg-pool.
# Grid = (image, row-tile).  The (1, 1, 128) pooled accumulator is the resident
# output block across the inner row axis; the full stem activation never hits HBM.
# ----------------------------------------------------------------------------
def _stem_pool_kernel(x_ref, w_ref, o_ref, *, inv_hw):
    r = pl.program_id(1)

    @pl.when(r == 0)
    def _():
        o_ref[...] = jnp.zeros_like(o_ref)

    s = jnp.dot(x_ref[0], w_ref[...], preferred_element_type=jnp.float32)   # (tr, 128)
    s = jnp.maximum(s, 0.0)                                                 # fused ReLU
    o_ref[...] += jnp.sum(s, axis=0)[None, None, :]                         # fused pool (sum)

    @pl.when(r == pl.num_programs(1) - 1)
    def _():
        o_ref[...] *= inv_hw                                                # sum -> mean


def pallas_stem_pool(patches, w_stem, inv_hw, *, tr_max=2048):
    """patches: (Nimg, Rp, K) bf16 (Rp % 8 == 0); w_stem: (K, Co) bf16 with Co % 128 == 0.
    Returns (Nimg, Co) f32 = per-image global-average-pool of ReLU(conv)."""
    Nimg, Rp, K = patches.shape
    Co = w_stem.shape[1]
    tr = _row_tile(Rp, tr_max)
    out = pl.pallas_call(
        functools.partial(_stem_pool_kernel, inv_hw=inv_hw),
        out_shape=jax.ShapeDtypeStruct((Nimg, 1, Co), jnp.float32),
        grid_spec=pltpu.PrefetchScalarGridSpec(
            num_scalar_prefetch=0,
            grid=(Nimg, Rp // tr),
            in_specs=[
                pl.BlockSpec((1, tr, K), lambda n, r: (n, r, 0)),
                pl.BlockSpec((K, Co), lambda n, r: (0, 0)),       # resident weights
            ],
            out_specs=pl.BlockSpec((1, 1, Co), lambda n, r: (n, 0, 0)),
        ),
        compiler_params=pltpu.CompilerParams(
            dimension_semantics=("parallel", "arbitrary"),
            vmem_limit_bytes=_VMEM_LIMIT),
    )(patches, w_stem)
    return out.reshape(Nimg, Co)


# ----------------------------------------------------------------------------
# Kernel 2: fused feature projection (both streams via block-diagonal weight) +
# classifier head (fc1 with folded BatchNorm1d -> ReLU -> fc2).  One launch; the
# hidden activation stays in VMEM.  Single-K-step matmuls write once (no RMW).
# ----------------------------------------------------------------------------
def _proj_head_kernel(x_ref, wp_ref, bp_ref, w1_ref, b1_ref, w2_ref, b2_ref, o_ref):
    feat = jnp.dot(x_ref[...].astype(wp_ref.dtype), wp_ref[...],
                   preferred_element_type=jnp.float32) + bp_ref[...]
    h = jnp.dot(feat.astype(w1_ref.dtype), w1_ref[...],
                preferred_element_type=jnp.float32) + b1_ref[...]
    h = jnp.maximum(h, 0.0)
    o_ref[...] = jnp.dot(h.astype(w2_ref.dtype), w2_ref[...],
                         preferred_element_type=jnp.float32) + b2_ref[...]


def pallas_proj_head(pooled, wp, bp, w1, b1, w2, b2, n_out, *, tm_max=256):
    """pooled: (M, 2*stem_ch) f32.  Returns (M, n_out) f32 logits."""
    M, Kp = pooled.shape
    Mp = _round_up(M, 8)
    tm = min(tm_max, Mp)
    Mp = _round_up(Mp, tm)
    x = jnp.pad(pooled, ((0, Mp - M), (0, 0)))       # tiny (few rows), negligible
    No = w2.shape[1]
    out = pl.pallas_call(
        _proj_head_kernel,
        out_shape=jax.ShapeDtypeStruct((Mp, No), jnp.float32),
        grid_spec=pltpu.PrefetchScalarGridSpec(
            num_scalar_prefetch=0,
            grid=(Mp // tm,),
            in_specs=[
                pl.BlockSpec((tm, Kp), lambda i: (i, 0)),
                pl.BlockSpec(wp.shape, lambda i: (0, 0)),
                pl.BlockSpec(bp.shape, lambda i: (0, 0)),
                pl.BlockSpec(w1.shape, lambda i: (0, 0)),
                pl.BlockSpec(b1.shape, lambda i: (0, 0)),
                pl.BlockSpec(w2.shape, lambda i: (0, 0)),
                pl.BlockSpec(b2.shape, lambda i: (0, 0)),
            ],
            out_specs=pl.BlockSpec((tm, No), lambda i: (i, 0)),
        ),
        compiler_params=pltpu.CompilerParams(
            dimension_semantics=("parallel",),
            vmem_limit_bytes=_VMEM_LIMIT),
    )(x, wp, bp, w1, b1, w2, b2)
    return out[:M, :n_out]


# ----------------------------------------------------------------------------
# im2col glue: NHWC strided slices + concat, (kh, kw, C)-major, NO transpose of
# the patch matrix (the weight is pre-ordered to match at prepare time).
# ----------------------------------------------------------------------------
def _im2col_nhwc(x, kh, kw, stride, pad):
    """x: (N, H, W, C) -> (N, Ho*Wo, kh*kw*C), K ordered as ((i*kw + j)*C + c)."""
    N, H, W, C = x.shape
    xp = jnp.pad(x, ((0, 0), (pad, pad), (pad, pad), (0, 0)))
    Ho = (H + 2 * pad - kh) // stride + 1
    Wo = (W + 2 * pad - kw) // stride + 1
    cols = []
    for i in range(kh):
        for j in range(kw):
            cols.append(xp[:, i:i + stride * Ho:stride, j:j + stride * Wo:stride, :])
    patches = jnp.concatenate(cols, axis=-1)         # (N, Ho, Wo, kh*kw*C)
    return patches.reshape(N, Ho * Wo, kh * kw * C), Ho, Wo


# ----------------------------------------------------------------------------
# Parameters
# ----------------------------------------------------------------------------
def init_params(key, num_class, feat_dim=256, stem_ch=64):
    ks = jax.random.split(key, 17)
    s = lambda k, shape, scale=0.05: scale * jax.random.normal(k, shape, jnp.float32)
    return {
        # mv-stream input BatchNorm2d(2) (eval-mode running stats / affine)
        "bn_mv_gamma": 1.0 + s(ks[0], (2,)),
        "bn_mv_beta": s(ks[1], (2,)),
        "bn_mv_mean": s(ks[2], (2,)),
        "bn_mv_var": 1.0 + jnp.abs(s(ks[3], (2,))),
        # backbone stems (conv1) + feature projections standing in for resnet bodies
        "conv1_iframe": s(ks[4], (stem_ch, 3, 7, 7)),
        "conv1_mv": s(ks[5], (stem_ch, 2, 7, 7)),
        "proj_iframe_w": s(ks[6], (stem_ch, feat_dim)),
        "proj_iframe_b": s(ks[7], (feat_dim,)),
        "proj_mv_w": s(ks[8], (stem_ch, feat_dim)),
        "proj_mv_b": s(ks[9], (feat_dim,)),
        # final = Linear(2*feat, 1024) -> BatchNorm1d(1024) -> ReLU -> Linear(1024, num_class)
        "fc1_w": s(ks[10], (2 * feat_dim, 1024)),
        "fc1_b": s(ks[11], (1024,)),
        "bn1d_gamma": 1.0 + s(ks[12], (1024,)),
        "bn1d_beta": s(ks[13], (1024,)),
        "bn1d_mean": s(ks[14], (1024,)),
        "bn1d_var": 1.0 + jnp.abs(s(ks[15], (1024,), 0.02)),
        "fc2_w": s(ks[16], (1024, num_class)),
        "fc2_b": jnp.zeros((num_class,), jnp.float32),
    }


def prepare_inference_params(params, *, eps=1e-5):
    """One-time, outside jit: fold BatchNorms, merge the two stems into one block-
    structured (kh,kw,C)-major weight, build the block-diagonal projection, pad the
    classifier output to a lane multiple, cast MXU weights to bf16."""
    stem_ch = params["conv1_iframe"].shape[0]
    feat_dim = params["proj_iframe_w"].shape[1]
    num_class = params["fc2_w"].shape[1]
    O = stem_ch

    # --- merged stem weight: (7*7*6, 2*stem_ch), channel order [if0..2, mv0..1, ones]
    # BN2d(mv) eval: BN(x) = s*x + t (zero outside spatial padding), so
    # conv(pad0(BN(x))) == conv_{w*s}(pad0(x)) + conv_{sum_c w*t}(pad0(ones)).
    s_mv = params["bn_mv_gamma"] / jnp.sqrt(params["bn_mv_var"] + eps)
    t_mv = params["bn_mv_beta"] - params["bn_mv_mean"] * s_mv
    w_if = params["conv1_iframe"]                                    # (O, 3, 7, 7)
    w_mv = params["conv1_mv"]                                        # (O, 2, 7, 7)
    W6 = jnp.zeros((7, 7, 6, 2 * O), jnp.float32)
    W6 = W6.at[:, :, 0:3, 0:O].set(jnp.transpose(w_if, (2, 3, 1, 0)))
    W6 = W6.at[:, :, 3:5, O:2 * O].set(
        jnp.transpose(w_mv * s_mv[None, :, None, None], (2, 3, 1, 0)))
    W6 = W6.at[:, :, 5, O:2 * O].set(
        jnp.transpose(jnp.sum(w_mv * t_mv[None, :, None, None], axis=1), (1, 2, 0)))
    stem_w = W6.reshape(7 * 7 * 6, 2 * O).astype(jnp.bfloat16)       # (294, 128)

    # --- block-diagonal projection (stand-in for the two resnet bodies)
    Wp = jnp.zeros((2 * O, 2 * feat_dim), jnp.float32)
    Wp = Wp.at[0:O, 0:feat_dim].set(params["proj_iframe_w"])
    Wp = Wp.at[O:2 * O, feat_dim:2 * feat_dim].set(params["proj_mv_w"])
    proj_w = Wp.astype(jnp.bfloat16)                                 # (128, 512)
    proj_b = jnp.concatenate([params["proj_iframe_b"],
                              params["proj_mv_b"]]).reshape(1, -1)   # (1, 512)

    # --- final head: fold BatchNorm1d into fc1; pad fc2 out dim to a lane multiple
    s1 = params["bn1d_gamma"] / jnp.sqrt(params["bn1d_var"] + eps)
    head_w1 = (params["fc1_w"] * s1[None, :]).astype(jnp.bfloat16)   # (512, 1024)
    head_b1 = ((params["fc1_b"] - params["bn1d_mean"]) * s1
               + params["bn1d_beta"]).reshape(1, -1)
    No = _round_up(num_class, 128)
    head_w2 = jnp.pad(params["fc2_w"],
                      ((0, 0), (0, No - num_class))).astype(jnp.bfloat16)  # (1024, No)
    head_b2 = jnp.pad(params["fc2_b"], (0, No - num_class)).reshape(1, -1)

    return {
        "stem_w": stem_w,
        "proj_w": proj_w, "proj_b": proj_b,
        "head_w1": head_w1, "head_b1": head_b1,
        "head_w2": head_w2, "head_b2": head_b2,
    }


# ----------------------------------------------------------------------------
# Forward
# ----------------------------------------------------------------------------
def model_forward(prep, inp, *, num_class, stem_ch=64, feat_dim=256):
    """inp: (B, T, 5, H, W) float32 -> (B*T, num_class) float32 logits."""
    B, T, C, H, W = inp.shape
    N = B * T
    x = inp.reshape(N, C, H, W)

    # NCHW -> NHWC on the raw 5-channel input (49x smaller than the patch matrix,
    # so this is the cheap place to transpose), then append the constant-ones
    # channel that carries the folded BatchNorm2d(mv) shift (zero-padded = exact).
    x_nhwc = jnp.transpose(x, (0, 2, 3, 1)).astype(jnp.bfloat16)      # (N, H, W, 5)
    ones = jnp.ones((N, H, W, 1), jnp.bfloat16)
    x6 = jnp.concatenate([x_nhwc, ones], axis=-1)                     # (N, H, W, 6)

    # TODO(synk): patches are still materialized in HBM; manual-DMA fusion of the
    # extraction into the stem kernel is the remaining traffic optimization.
    patches, Ho, Wo = _im2col_nhwc(x6, 7, 7, 2, 3)                    # (N, Ho*Wo, 294)

    R = Ho * Wo
    Rp = _round_up(R, 8)
    if Rp != R:  # zero rows (incl. zero ones-channel) add 0 to the ReLU'd sum -> exact
        patches = jnp.pad(patches, ((0, 0), (0, Rp - R), (0, 0)))

    # merged stems + ReLU + global-average-pool, fused in one kernel
    pooled = pallas_stem_pool(patches, prep["stem_w"], 1.0 / float(R))  # (N, 128) f32

    # concat(feat_if, feat_mv) -> dropout (eval identity) -> fc1(+BN1d)+ReLU -> fc2,
    # all fused in one kernel via the block-diagonal projection weight.
    return pallas_proj_head(pooled, prep["proj_w"], prep["proj_b"],
                            prep["head_w1"], prep["head_b1"],
                            prep["head_w2"], prep["head_b2"], num_class)


if __name__ == "__main__":
    num_class = 10
    B, T, C, H, W = 2, 3, 5, 16, 16   # (batch, num_segments, iframe(3)+mv(2), H, W)

    key = jax.random.PRNGKey(0)
    k_par, k_inp = jax.random.split(key)
    params = init_params(k_par, num_class)
    prep = prepare_inference_params(params)   # fold BN / reorder / pad / cast once, outside jit
    inp = jax.random.normal(k_inp, (B, T, C, H, W), jnp.float32)

    fwd = jax.jit(functools.partial(model_forward, num_class=num_class))
    out = fwd(prep, inp)
    jax.block_until_ready(out)
    assert out.shape == (B * T, num_class), out.shape
    assert bool(jnp.all(jnp.isfinite(out)))
    print("KERNEL_OK")
</pallas_src>

<mosaic_0001>
module attributes {stable_mosaic.version = 11 : i64} {
  func.func @_stem_pool_kernel(%arg0: i32, %arg1: i32, %arg2: memref<1x64x294xbf16, #tpu.memory_space<vmem>>, %arg3: memref<294x128xbf16, #tpu.memory_space<vmem>>, %arg4: memref<1x1x128xf32, #tpu.memory_space<vmem>>) attributes {dimension_semantics = [#tpu.dimension_semantics<parallel>, #tpu.dimension_semantics<arbitrary>], iteration_bounds = array<i64: 6, 1>, scalar_prefetch = 0 : i64, scratch_operands = 0 : i64, tpu.core_type = #tpu.core_type<tc>, window_params = [{transform_indices = @transform_0, window_bounds = array<i64: 1, 64, 294>}, {pipeline_mode = #tpu.pipeline_mode<synchronous>, transform_indices = @transform_1, window_bounds = array<i64: 294, 128>}, {transform_indices = @transform_2, window_bounds = array<i64: 1, 1, 128>}]} {
    %c0_i32 = arith.constant 0 : i32
    %0 = arith.cmpi eq, %arg1, %c0_i32 : i32
    %1 = arith.extui %0 : i1 to i32
    %c0_i32_0 = arith.constant 0 : i32
    %2 = arith.cmpi ne, %1, %c0_i32_0 : i32
    scf.if %2 {
      %cst_15 = arith.constant 0.000000e+00 : f32
      %17 = vector.broadcast %cst_15 : f32 to vector<1x1x128xf32>
      %c0_16 = arith.constant 0 : index
      %c0_17 = arith.constant 0 : index
      %c0_18 = arith.constant 0 : index
      %18 = vector.load %arg4[%c0_16, %c0_17, %c0_18] : memref<1x1x128xf32, #tpu.memory_space<vmem>>, vector<1x1x128xf32>
      tpu.vector_store %arg4[%c0_16, %c0_17, %c0_18], %17 {strides = array<i32>} : memref<1x1x128xf32, #tpu.memory_space<vmem>>, vector<1x1x128xf32>,
    } else {
    }
    %c0 = arith.constant 0 : index
    %c0_1 = arith.constant 0 : index
    %c0_2 = arith.constant 0 : index
    %3 = vector.load %arg2[%c0, %c0_1, %c0_2] : memref<1x64x294xbf16, #tpu.memory_space<vmem>>, vector<1x64x294xbf16>
    %4 = vector.shape_cast %3 : vector<1x64x294xbf16> to vector<64x294xbf16>
    %c0_3 = arith.constant 0 : index
    %c0_4 = arith.constant 0 : index
    %5 = vector.load %arg3[%c0_3, %c0_4] : memref<294x128xbf16, #tpu.memory_space<vmem>>, vector<294x128xbf16>
    %cst = arith.constant dense<0.000000e+00> : vector<64x128xf32>
    %6 = tpu.matmul %4, %5, %cst {dimension_numbers = #tpu.dot_dimension_numbers<[1], [0], [0], [1], [0, 0, 1, 1], [], []>} : vector<64x294xbf16>, vector<294x128xbf16>, vector<64x128xf32> -> vector<64x128xf32>
    %cst_5 = arith.constant 0.000000e+00 : f32
    %7 = vector.broadcast %cst_5 : f32 to vector<64x128xf32>
    %8 = arith.maximumf %6, %7 : vector<64x128xf32>
    %c0_6 = arith.constant 0 : index
    %c0_7 = arith.constant 0 : index
    %c0_8 = arith.constant 0 : index
    %9 = vector.load %arg4[%c0_6, %c0_7, %c0_8] : memref<1x1x128xf32, #tpu.memory_space<vmem>>, vector<1x1x128xf32>
    %cst_9 = arith.constant dense<0.000000e+00> : vector<128xf32>
    %10 = vector.multi_reduction <add>, %8, %cst_9 [0] : vector<64x128xf32> to vector<128xf32>
    %11 = vector.shape_cast %10 : vector<128xf32> to vector<1x1x128xf32>
    %12 = arith.addf %9, %11 : vector<1x1x128xf32>
    %c0_10 = arith.constant 0 : index
    %c0_11 = arith.constant 0 : index
    %c0_12 = arith.constant 0 : index
    %13 = vector.load %arg4[%c0_10, %c0_11, %c0_12] : memref<1x1x128xf32, #tpu.memory_space<vmem>>, vector<1x1x128xf32>
    tpu.vector_store %arg4[%c0_10, %c0_11, %c0_12], %12 {strides = array<i32>} : memref<1x1x128xf32, #tpu.memory_space<vmem>>, vector<1x1x128xf32>,
    %c0_i32_13 = arith.constant 0 : i32
    %14 = arith.cmpi eq, %arg1, %c0_i32_13 : i32
    %15 = arith.extui %14 : i1 to i32
    %c0_i32_14 = arith.constant 0 : i32
    %16 = arith.cmpi ne, %15, %c0_i32_14 : i32
    scf.if %16 {
      %c0_15 = arith.constant 0 : index
      %c0_16 = arith.constant 0 : index
      %c0_17 = arith.constant 0 : index
      %17 = vector.load %arg4[%c0_15, %c0_16, %c0_17] : memref<1x1x128xf32, #tpu.memory_space<vmem>>, vector<1x1x128xf32>
      %cst_18 = arith.constant 1.562500e-02 : f32
      %18 = vector.broadcast %cst_18 : f32 to vector<1x1x128xf32>
      %19 = arith.mulf %17, %18 : vector<1x1x128xf32>
      %c0_19 = arith.constant 0 : index
      %c0_20 = arith.constant 0 : index
      %c0_21 = arith.constant 0 : index
      %20 = vector.load %arg4[%c0_19, %c0_20, %c0_21] : memref<1x1x128xf32, #tpu.memory_space<vmem>>, vector<1x1x128xf32>
      tpu.vector_store %arg4[%c0_19, %c0_20, %c0_21], %19 {strides = array<i32>} : memref<1x1x128xf32, #tpu.memory_space<vmem>>, vector<1x1x128xf32>,
    } else {
    }
    return
  }
  func.func @transform_0(%arg0: i32, %arg1: i32) -> (i32, i32, i32) {
    %c0_i32 = arith.constant 0 : i32
    %c0_i32_0 = arith.constant 0 : i32
    return %arg0, %arg1, %c0_i32 : i32, i32, i32
  }
  func.func @transform_1(%arg0: i32, %arg1: i32) -> (i32, i32) {
    %c0_i32 = arith.constant 0 : i32
    %c0_i32_0 = arith.constant 0 : i32
    %c0_i32_1 = arith.constant 0 : i32
    return %c0_i32, %c0_i32_0 : i32, i32
  }
  func.func @transform_2(%arg0: i32, %arg1: i32) -> (i32, i32, i32) {
    %c0_i32 = arith.constant 0 : i32
    %c0_i32_0 = arith.constant 0 : i32
    %c0_i32_1 = arith.constant 0 : i32
    return %arg0, %c0_i32, %c0_i32_0 : i32, i32, i32
  }
}

module attributes {stable_mosaic.version = 11 : i64} {
  func.func @_proj_head_kernel(%arg0: i32, %arg1: memref<8x128xf32, #tpu.memory_space<vmem>>, %arg2: memref<128x512xbf16, #tpu.memory_space<vmem>>, %arg3: memref<1x512xf32, #tpu.memory_space<vmem>>, %arg4: memref<512x1024xbf16, #tpu.memory_space<vmem>>, %arg5: memref<1x1024xf32, #tpu.memory_space<vmem>>, %arg6: memref<1024x128xbf16, #tpu.memory_space<vmem>>, %arg7: memref<1x128xf32, #tpu.memory_space<vmem>>, %arg8: memref<8x128xf32, #tpu.memory_space<vmem>>) attributes {dimension_semantics = [#tpu.dimension_semantics<parallel>], iteration_bounds = array<i64: 1>, scalar_prefetch = 0 : i64, scratch_operands = 0 : i64, tpu.core_type = #tpu.core_type<tc>, window_params = [{transform_indices = @transform_0, window_bounds = array<i64: 8, 128>}, {pipeline_mode = #tpu.pipeline_mode<synchronous>, transform_indices = @transform_1, window_bounds = array<i64: 128, 512>}, {pipeline_mode = #tpu.pipeline_mode<synchronous>, transform_indices = @transform_2, window_bounds = array<i64: 1, 512>}, {pipeline_mode = #tpu.pipeline_mode<synchronous>, transform_indices = @transform_3, window_bounds = array<i64: 512, 1024>}, {pipeline_mode = #tpu.pipeline_mode<synchronous>, transform_indices = @transform_4, window_bounds = array<i64: 1, 1024>}, {pipeline_mode = #tpu.pipeline_mode<synchronous>, transform_indices = @transform_5, window_bounds = array<i64: 1024, 128>}, {pipeline_mode = #tpu.pipeline_mode<synchronous>, transform_indices = @transform_6, window_bounds = array<i64: 1, 128>}, {transform_indices = @transform_7, window_bounds = array<i64: 8, 128>}]} {
    %c0 = arith.constant 0 : index
    %c0_0 = arith.constant 0 : index
    %0 = vector.load %arg1[%c0, %c0_0] : memref<8x128xf32, #tpu.memory_space<vmem>>, vector<8x128xf32>
    %1 = arith.truncf %0 : vector<8x128xf32> to vector<8x128xbf16>
    %c0_1 = arith.constant 0 : index
    %c0_2 = arith.constant 0 : index
    %2 = vector.load %arg2[%c0_1, %c0_2] : memref<128x512xbf16, #tpu.memory_space<vmem>>, vector<128x512xbf16>
    %cst = arith.constant dense<0.000000e+00> : vector<8x512xf32>
    %3 = tpu.matmul %1, %2, %cst {dimension_numbers = #tpu.dot_dimension_numbers<[1], [0], [0], [1], [0, 0, 1, 1], [], []>} : vector<8x128xbf16>, vector<128x512xbf16>, vector<8x512xf32> -> vector<8x512xf32>
    %c0_3 = arith.constant 0 : index
    %c0_4 = arith.constant 0 : index
    %4 = vector.load %arg3[%c0_3, %c0_4] : memref<1x512xf32, #tpu.memory_space<vmem>>, vector<1x512xf32>
    %5 = vector.broadcast %4 : vector<1x512xf32> to vector<8x512xf32>
    %6 = arith.addf %3, %5 : vector<8x512xf32>
    %7 = arith.truncf %6 : vector<8x512xf32> to vector<8x512xbf16>
    %c0_5 = arith.constant 0 : index
    %c0_6 = arith.constant 0 : index
    %8 = vector.load %arg4[%c0_5, %c0_6] : memref<512x1024xbf16, #tpu.memory_space<vmem>>, vector<512x1024xbf16>
    %cst_7 = arith.constant dense<0.000000e+00> : vector<8x1024xf32>
    %9 = tpu.matmul %7, %8, %cst_7 {dimension_numbers = #tpu.dot_dimension_numbers<[1], [0], [0], [1], [0, 0, 1, 1], [], []>} : vector<8x512xbf16>, vector<512x1024xbf16>, vector<8x1024xf32> -> vector<8x1024xf32>
    %c0_8 = arith.constant 0 : index
    %c0_9 = arith.constant 0 : index
    %10 = vector.load %arg5[%c0_8, %c0_9] : memref<1x1024xf32, #tpu.memory_space<vmem>>, vector<1x1024xf32>
    %11 = vector.broadcast %10 : vector<1x1024xf32> to vector<8x1024xf32>
    %12 = arith.addf %9, %11 : vector<8x1024xf32>
    %cst_10 = arith.constant 0.000000e+00 : f32
    %13 = vector.broadcast %cst_10 : f32 to vector<8x1024xf32>
    %14 = arith.maximumf %12, %13 : vector<8x1024xf32>
    %15 = arith.truncf %14 : vector<8x1024xf32> to vector<8x1024xbf16>
    %c0_11 = arith.constant 0 : index
    %c0_12 = arith.constant 0 : index
    %16 = vector.load %arg6[%c0_11, %c0_12] : memref<1024x128xbf16, #tpu.memory_space<vmem>>, vector<1024x128xbf16>
    %cst_13 = arith.constant dense<0.000000e+00> : vector<8x128xf32>
    %17 = tpu.matmul %15, %16, %cst_13 {dimension_numbers = #tpu.dot_dimension_numbers<[1], [0], [0], [1], [0, 0, 1, 1], [], []>} : vector<8x1024xbf16>, vector<1024x128xbf16>, vector<8x128xf32> -> vector<8x128xf32>
    %c0_14 = arith.constant 0 : index
    %c0_15 = arith.constant 0 : index
    %18 = vector.load %arg7[%c0_14, %c0_15] : memref<1x128xf32, #tpu.memory_space<vmem>>, vector<1x128xf32>
    %19 = vector.broadcast %18 : vector<1x128xf32> to vector<8x128xf32>
    %20 = arith.addf %17, %19 : vector<8x128xf32>
    %c0_16 = arith.constant 0 : index
    %c0_17 = arith.constant 0 : index
    %21 = vector.load %arg8[%c0_16, %c0_17] : memref<8x128xf32, #tpu.memory_space<vmem>>, vector<8x128xf32>
    tpu.vector_store %arg8[%c0_16, %c0_17], %20 {strides = array<i32>} : memref<8x128xf32, #tpu.memory_space<vmem>>, vector<8x128xf32>,
    return
  }
  func.func @transform_0(%arg0: i32) -> (i32, i32) {
    %c0_i32 = arith.constant 0 : i32
    %c0_i32_0 = arith.constant 0 : i32
    return %arg0, %c0_i32 : i32, i32
  }
  func.func @transform_1(%arg0: i32) -> (i32, i32) {
    %c0_i32 = arith.constant 0 : i32
    %c0_i32_0 = arith.constant 0 : i32
    %c0_i32_1 = arith.constant 0 : i32
    return %c0_i32, %c0_i32_0 : i32, i32
  }
  func.func @transform_2(%arg0: i32) -> (i32, i32) {
    %c0_i32 = arith.constant 0 : i32
    %c0_i32_0 = arith.constant 0 : i32
    %c0_i32_1 = arith.constant 0 : i32
    return %c0_i32, %c0_i32_0 : i32, i32
  }
  func.func @transform_3(%arg0: i32) -> (i32, i32) {
    %c0_i32 = arith.constant 0 : i32
    %c0_i32_0 = arith.constant 0 : i32
    %c0_i32_1 = arith.constant 0 : i32
    return %c0_i32, %c0_i32_0 : i32, i32
  }
  func.func @transform_4(%arg0: i32) -> (i32, i32) {
    %c0_i32 = arith.constant 0 : i32
    %c0_i32_0 = arith.constant 0 : i32
    %c0_i32_1 = arith.constant 0 : i32
    return %c0_i32, %c0_i32_0 : i32, i32
  }
  func.func @transform_5(%arg0: i32) -> (i32, i32) {
    %c0_i32 = arith.constant 0 : i32
    %c0_i32_0 = arith.constant 0 : i32
    %c0_i32_1 = arith.constant 0 : i32
    return %c0_i32, %c0_i32_0 : i32, i32
  }
  func.func @transform_6(%arg0: i32) -> (i32, i32) {
    %c0_i32 = arith.constant 0 : i32
    %c0_i32_0 = arith.constant 0 : i32
    %c0_i32_1 = arith.constant 0 : i32
    return %c0_i32, %c0_i32_0 : i32, i32
  }
  func.func @transform_7(%arg0: i32) -> (i32, i32) {
    %c0_i32 = arith.constant 0 : i32
    %c0_i32_0 = arith.constant 0 : i32
    return %arg0, %c0_i32 : i32, i32
  }
}

</mosaic_0001>

<bundles_post_ra>
// kernel: model_forward.2
= control target key start
LH: loop header
LB: loop body
LE: loop exit
PB: predicated region body
PF: predicated region fallthrough
CT: control target
= control target key end

     0   :  { %s848_s9 = smov 0   ;;  %s850_s10 = smov 0   ;;  %s967_s0 = inlined_call_operand.vmem [shape: bf16[6,64,294], index: 0, kind: input, shape index: {}]   ;;  %s968_s1 = inlined_call_operand.vmem [shape: bf16[294,128], index: 1, kind: input, shape index: {}]   ;;  %s969_s2 = inlined_call_operand.vmem [shape: f32[6,1,128], index: 2, kind: output, shape index: {}]  }
   0x1   :  { %s852_s11 = smov 0  }
   0x2 LB: > { %s24_s12 = sadd.s32 1, %s826_s10  ;;  %p646_p0 = scmp.ge.s32.totalorder %s830_s11, 1  ;;  %s830_s11 = sphi %s852_s11, %s12_s11   ;;  %s826_s10 = sphi %s850_s10, %s971_s10   ;;  %s822_s9 = sphi %s848_s9, %s970_s9  }
   0x3   : > { %p26_p1 = scmp.ge.s32.totalorder %s24_s12, 6  ;;  %p132_p2 = scmp.lt.s32.totalorder %s830_s11, 7 }
   0x5   : > { %s973_s12 = smov (%p26_p1, %s24_s12), 0  ;;  %p133_p3 = pnand %p646_p0, %p132_p2 }
   0x6   : > { %p158_p4 = scmp.lt.s32.totalorder (!%p133_p3), %s822_s9, 5 }
   0x7   : > { %136 = sbr.rel (%p133_p3) target bundleno = 301 (0x12d), region = 28 }
   0xc   : > { %v773_v0 = vld [vmem:[%s968_s1 + $0x78] sm:$0xff]   ;;  %v775_v2 = vld [vmem:[%s968_s1 + $0x70] sm:$0xff]   ;;  %v777_v4 = vld [vmem:[%s968_s1 + $0x68] sm:$0xff]   ;;  %s975_s9 = smov (!%p158_p4, %s822_s9), 5  ;;  %vm414_vm0 = vcmask 1042432   ;;  %vm401_vm1 = vcmask 310272  }
   0xd   : > { %v774_v1 = vld [vmem:[%s968_s1 + $0x38] sm:$0xff]   ;;  %685 = vmatprep.subr.bf16.mxu0 %v773_v0  ;;  %v776_v3 = vld [vmem:[%s968_s1 + $0x30] sm:$0xff]   ;;  %v778_v5 = vld [vmem:[%s968_s1 + $0x28] sm:$0xff]   ;;  %s747_s29 = smul.u32 96, %s975_s9  ;;  %s951_s5 = scalar_lea.vmem %s969_s2, %s975_s9  ;;  %v832_v32 = vmov 0.0  }
   0xe   : > { %686 = vmatpush3.bf16.msra.mxu0 %v774_v1  ;;  %v779_v6 = vld [vmem:[%s968_s1 + $0x60] sm:$0xff]   ;;  %v781_v8 = vld [vmem:[%s968_s1 + $0x58] sm:$0xff]   ;;  %v785_v9 = vld [vmem:[%s968_s1 + $0x90] ss:$0 sps:$4 sm:$0x77]   ;;  %176 = vst [vmem:[%s951_s5] sm:$0x1] %v832_v32 }
   0xf   : > { %687 = vmatprep.subr.bf16.mxu0 %v775_v2  ;;  %v780_v7 = vld [vmem:[%s968_s1 + $0x20] sm:$0xff]   ;;  %v782_v10 = vld [vmem:[%s968_s1 + $0x18] sm:$0xff]   ;;  %746 = vmatprep.subr.msk.bf16.mxu1 %vm414_vm0, %v785_v9  ;;  %v416_v11 = vsel %vm414_vm0, %v785_v9, 0  ;;  %v788_v12 = vld [vmem:[%s968_s1 + $0x88] sm:$0xff]   ;;  %s911_s18 = scalar_lea.vmem %s967_s0, %s747_s29 }
  0x10   : > { %733 = vmatpush3.bf16.msra.mxu1 %v416_v11  ;;  %v783_v13 = vld [vmem:[%s968_s1 + $0x50] sm:$0xff]   ;;  %v791_v15 = vld [vmem:[%s968_s1 + $0x80] sm:$0xff]   ;;  %v786_v16 = vld [vmem:[%s968_s1 + $0x48] sm:$0xff]  }
  0x11   : > { %v784_v14 = vld [vmem:[%s968_s1 + $0x10] sm:$0xff]   ;;  %734 = vmatprep.subr.bf16.mxu1 %v788_v12  ;;  %v796_v19 = vld [vmem:[%s911_s18 + $0x20] ss:$12 sps:$4 sm:$0xff]   ;;  %v802_v22 = vld [vmem:[%s911_s18 + $0x38] ss:$12 sps:$4 sm:$0xff]  }
  0x12   : > { %688 = vmatpush3.bf16.msra.mxu0 %v776_v3  ;;  %v794_v17 = vld [vmem:[%s911_s18 + $0x4] ss:$12 sps:$4 sm:$0xff]   ;;  %v795_v18 = vld [vmem:[%s911_s18 + $0x8] ss:$12 sps:$4 sm:$0xff]   ;;  %v792_v24 = vld [vmem:[%s911_s18] ss:$12 sps:$4 sm:$0xff]  }
  0x13   : > { %689 = vmatprep.subr.bf16.mxu0 %v777_v4  ;;  %450 = vmatprep.mubr.bf16.mxu0 %v794_v17  ;;  %v787_v20 = vld [vmem:[%s968_s1 + $0x8] sm:$0xff]   ;;  %v789_v21 = vld [vmem:[%s968_s1 + $0x40] sm:$0xff]   ;;  %v804_v25 = vld [vmem:[%s911_s18 + $0x50] ss:$12 sps:$4 sm:$0xff]  }
  0x14   : > { %735 = vmatpush3.bf16.msra.mxu1 %v788_v12  ;;  %738 = vmatprep.mubr.msk.bf16.mxu1 %vm401_vm1, %v795_v18  ;;  %v790_v23 = vld [vmem:[%s968_s1] sm:$0xff]   ;;  %v797_v26 = vld [vmem:[%s911_s18 + $0x1c] ss:$12 sps:$4 sm:$0xff]   ;;  %v805_v30 = vld [vmem:[%s911_s18 + $0x4c] ss:$12 sps:$4 sm:$0xff]  }
  0x15   : > { %736 = vmatprep.subr.bf16.mxu1 %v791_v15  ;;  %v799_v27 = vld [vmem:[%s911_s18 + $0x18] ss:$12 sps:$4 sm:$0xff]   ;;  %v800_v28 = vld [vmem:[%s911_s18 + $0x34] ss:$12 sps:$4 sm:$0xff]   ;;  %v803_v29 = vld [vmem:[%s911_s18 + $0x30] ss:$12 sps:$4 sm:$0xff]  }
  0x16   : > { %690 = vmatpush3.bf16.msra.mxu0 %v778_v5  ;;  %v807_v31 = vld [vmem:[%s911_s18 + $0x48] ss:$12 sps:$4 sm:$0xff]  }
  0x17   : > { %691 = vmatprep.subr.bf16.mxu0 %v779_v6 }
  0x18   : > { %737 = vmatpush3.bf16.msra.mxu1 %v791_v15 }
  0x1a   : > { %692 = vmatpush3.bf16.msra.mxu0 %v780_v7 }
  0x1b   : > { %693 = vmatprep.subr.bf16.mxu0 %v781_v8  ;;  %739 = vmatmul.mubr.msk.bf16.vlgmr.msra.gmra.mxu1 %vm401_vm1, %v796_v19 }
  0x1c   : > { %742 = vmatprep.mubr.msk.bf16.mxu1 %vm401_vm1, %v802_v22 }
  0x1e   : > { %694 = vmatpush3.bf16.msra.mxu0 %v782_v10 }
  0x1f   : > { %695 = vmatprep.subr.bf16.mxu0 %v783_v13 }
  0x22   : > { %696 = vmatpush3.bf16.msra.mxu0 %v784_v14 }
  0x23   : > { %697 = vmatprep.subr.bf16.mxu0 %v786_v16  ;;  %743 = vmatmul.mubr.msk.bf16.gmra.mxu1 %vm401_vm1, %v804_v25 }
  0x26   : > { %698 = vmatpush3.bf16.msra.mxu0 %v787_v20 }
  0x27   : > { %699 = vmatprep.subr.bf16.mxu0 %v789_v21 }
  0x2a   : > { %700 = vmatpush3.bf16.msra.mxu0 %v790_v23 }
  0x2d   : > { %451 = vmatmul.mubr.bf16.vlgmr.msra.gmra.mxu0 %v792_v24 }
  0x2e   : > { %458 = vmatprep.mubr.bf16.mxu0 %v797_v26 }
  0x35   : > { %459 = vmatmul.mubr.bf16.gmra.mxu0 %v799_v27 }
  0x36   : > { %466 = vmatprep.mubr.bf16.mxu0 %v800_v28 }
  0x3d   : > { %467 = vmatmul.mubr.bf16.gmra.mxu0 %v803_v29  ;;  %v556_v29 = vld [vmem:[%s951_s5] sm:$0x1] }
  0x3e   : > { %474 = vmatprep.mubr.bf16.mxu0 %v805_v30 }
  0x45   : > { %475 = vmatmul.mubr.bf16.gmra.mxu0 %v807_v31 }
  0xdb   : > { %v740_v33 = vpop.f32.mrf.mxu1 }
  0xdd   : > { %v517_v36 = vpop.f32.mrf.mxu1 }
  0xdf   : > { %v741_v39 = vpop.f32.mrf.mxu1 }
  0xe1   : > { %v520_v41 = vpop.f32.mrf.mxu1 }
  0xe3   : > { %v744_v44 = vpop.f32.mrf.mxu1 }
  0xe5   : > { %v533_v50 = vpop.f32.mrf.mxu1 }
  0xe7   : > { %v745_v58 = vpop.f32.mrf.mxu1 }
  0xe9   : > { %v536_v2 = vpop.f32.mrf.mxu1 }
  0xed   : > { %v701_v34 = vpop.f32.mrf.mxu0 }
  0xef   : > { %v702_v35 = vpop.f32.mrf.mxu0 }
  0xf0   : > { %v703_v47 = vadd.f32 %v702_v35, %v701_v34 }
  0xf1   : > { %v704_v37 = vpop.f32.mrf.mxu0 }
  0xf2   : > { %v518_v54 = vadd.f32 %v703_v47, %v517_v36 }
  0xf3   : > { %v705_v38 = vpop.f32.mrf.mxu0 }
  0xf4   : > { %v706_v45 = vadd.f32 %v705_v38, %v704_v37  ;;  %v548_v62 = vmax.f32 %v518_v54, 0.0 }
  0xf5   : > { %v707_v40 = vpop.f32.mrf.mxu0 }
  0xf6   : > { %v521_v51 = vadd.f32 %v706_v45, %v520_v41 }
  0xf7   : > { %v708_v42 = vpop.f32.mrf.mxu0 }
  0xf8   : > { %v709_v48 = vadd.f32 %v708_v42, %v707_v40  ;;  %v549_v59 = vmax.f32 %v521_v51, 0.0 }
  0xf9   : > { %v710_v43 = vpop.f32.mrf.mxu0 }
  0xfa   : > { %v526_v55 = vadd.f32 %v740_v33, %v709_v48  ;;  %v557_v4 = vadd.f32 %v549_v59, %v548_v62 }
  0xfb   : > { %v711_v46 = vpop.f32.mrf.mxu0 }
  0xfc   : > { %v712_v52 = vadd.f32 %v711_v46, %v710_v43  ;;  %v550_v63 = vmax.f32 %v526_v55, 0.0 }
  0xfd   : > { %v713_v49 = vpop.f32.mrf.mxu0 }
  0xfe   : > { %v529_v60 = vadd.f32 %v741_v39, %v712_v52  ;;  %v558_v8 = vadd.f32 %v557_v4, %v550_v63 }
  0xff   : > { %v714_v53 = vpop.f32.mrf.mxu0 }
 0x100   : > { %v715_v56 = vadd.f32 %v714_v53, %v713_v49  ;;  %v551_v5 = vmax.f32 %v529_v60, 0.0 }
 0x101   : > { %v716_v57 = vpop.f32.mrf.mxu0 }
 0x102   : > { %v534_v0 = vadd.f32 %v715_v56, %v533_v50  ;;  %v559_v12 = vadd.f32 %v558_v8, %v551_v5 }
 0x103   : > { %v717_v61 = vpop.f32.mrf.mxu0 }
 0x104   : > { %v718_v1 = vadd.f32 %v717_v61, %v716_v57  ;;  %v552_v9 = vmax.f32 %v534_v0, 0.0 }
 0x105   : > { %v719_v3 = vpop.f32.mrf.mxu0 }
 0x106   : > { %v537_v6 = vadd.f32 %v718_v1, %v536_v2  ;;  %v560_v16 = vadd.f32 %v559_v12, %v552_v9 }
 0x107   : > { %v720_v7 = vpop.f32.mrf.mxu0 }
 0x108   : > { %v721_v10 = vadd.f32 %v720_v7, %v719_v3  ;;  %v553_v13 = vmax.f32 %v537_v6, 0.0 }
 0x109   : > { %v722_v11 = vpop.f32.mrf.mxu0 }
 0x10a   : > { %v542_v14 = vadd.f32 %v744_v44, %v721_v10  ;;  %v561_v19 = vadd.f32 %v560_v16, %v553_v13 }
 0x10b   : > { %v723_v15 = vpop.f32.mrf.mxu0 }
 0x10c   : > { %v554_v17 = vmax.f32 %v542_v14, 0.0  ;;  %v724_v18 = vadd.f32 %v723_v15, %v722_v11 }
 0x10e   : > { %v545_v20 = vadd.f32 %v745_v58, %v724_v18  ;;  %v562_v21 = vadd.f32 %v561_v19, %v554_v17 }
 0x110   : > { %v555_v22 = vmax.f32 %v545_v20, 0.0 }
 0x112   : > { %v563_v23 = vadd.f32 %v562_v21, %v555_v22 }
 0x114   : > { %v564_v24 = vrot.slane %v563_v23, 4 }
 0x116   : > { %v565_v25 = vadd.f32 %v564_v24, %v563_v23 }
 0x118   : > { %v566_v26 = vrot.slane %v565_v25, 2 }
 0x11a   : > { %v567_v27 = vadd.f32 %v566_v26, %v565_v25 }
 0x11c   : > { %v568_v28 = vrot.slane %v567_v27, 1 }
 0x11e   : > { %v569_v30 = vadd.f32 %v568_v28, %v567_v27 }
 0x120   : > { %v570_v31 = vadd.f32 %v569_v30, %v556_v29 }
 0x122   : > { %571 = vst [vmem:[%s951_s5] sm:$0x1] %v570_v31 }
 0x129   : > { %v575_v32 = vld [vmem:[%s951_s5] sm:$0x1] }
 0x12a   : > { %v576_v33 = vmul.f32 0.015625, %v575_v32 }
 0x12c   : > { %577 = vst [vmem:[%s951_s5] sm:$0x1] %v576_v33 }
 0x12d PF: > { %s12_s11 = sadd.s32 1, %s830_s11   ;;  %s970_s9 = smov %s826_s10 }
 0x12e   : > { %p9_p5 = scmp.ge.s32.totalorder %s12_s11, 8   ;;  %s971_s10 = smov %s973_s12 }
 0x130   :  { %11 = sbr.rel (!%p9_p5) target bundleno = 2 (0x2), region = 66 }

// kernel: model_forward.3
= control target key start
LH: loop header
LB: loop body
LE: loop exit
PB: predicated region body
PF: predicated region fallthrough
CT: control target
= control target key end

     0   :  { %v3523_v2 = vmov 0   ;;  %s4696_s0 = inlined_call_operand.vmem [shape: f32[8,128], index: 0, kind: input, shape index: {}]   ;;  %s4697_s1 = inlined_call_operand.vmem [shape: bf16[128,512], index: 1, kind: input, shape index: {}]   ;;  %s4698_s2 = inlined_call_operand.vmem [shape: f32[1,512], index: 2, kind: input, shape index: {}]   ;;  %s4699_s3 = inlined_call_operand.vmem [shape: bf16[512,1024], index: 3, kind: input, shape index: {}]   ;;  %s4700_s4 = inlined_call_operand.vmem [shape: f32[1,1024], index: 4, kind: input, shape index: {}]   ;;  %s4701_s5 = inlined_call_operand.vmem [shape: bf16[1024,128], index: 5, kind: input, shape index: {}]   ;;  %s4702_s6 = inlined_call_operand.vmem [shape: f32[1,128], index: 6, kind: input, shape index: {}]   ;;  %s4703_s7 = inlined_call_operand.hbm [shape: f32[8,128], index: 7, kind: output, shape index: {}]  }
   0x1   :  { %v3389_v0 = vld [vmem:[%s4697_s1 + $0xe4] ss:$16 sps:$4 sm:$0xff]   ;;  %v3391_v1 = vld [vmem:[%s4697_s1 + $0xec] ss:$16 sps:$4 sm:$0xff]   ;;  %276 = vmatprep.mubr.bf16.mxu0 %v3523_v2  ;;  %317 = vmatprep.mubr.bf16.mxu1 %v3523_v2  ;;  %v3393_v3 = vld [vmem:[%s4697_s1 + $0xe0] ss:$16 sps:$4 sm:$0xff]  }
   0x2   :  { %244 = vmatprep.subr.bf16.mxu0 %v3389_v0  ;;  %v3394_v4 = vld [vmem:[%s4697_s1 + $0xe8] ss:$16 sps:$4 sm:$0xff]   ;;  %285 = vmatprep.subr.bf16.mxu1 %v3391_v1  ;;  %v3395_v5 = vld [vmem:[%s4697_s1 + $0xc4] ss:$16 sps:$4 sm:$0xff]   ;;  %v3397_v6 = vld [vmem:[%s4697_s1 + $0xcc] ss:$16 sps:$4 sm:$0xff]  }
   0x3   :  { %245 = vmatpush1.bf16.msra.mxu0 %v3393_v3  ;;  %286 = vmatpush1.bf16.msra.mxu1 %v3394_v4  ;;  %v3399_v7 = vld [vmem:[%s4697_s1 + $0xc0] ss:$16 sps:$4 sm:$0xff]   ;;  %v3400_v8 = vld [vmem:[%s4697_s1 + $0xc8] ss:$16 sps:$4 sm:$0xff]   ;;  %v3401_v9 = vld [vmem:[%s4697_s1 + $0xa4] ss:$16 sps:$4 sm:$0xff]  }
   0x4   :  { %246 = vmatprep.subr.bf16.mxu0 %v3395_v5  ;;  %287 = vmatprep.subr.bf16.mxu1 %v3397_v6  ;;  %v3403_v10 = vld [vmem:[%s4697_s1 + $0xac] ss:$16 sps:$4 sm:$0xff]   ;;  %v3405_v11 = vld [vmem:[%s4697_s1 + $0xa0] ss:$16 sps:$4 sm:$0xff]   ;;  %v3406_v12 = vld [vmem:[%s4697_s1 + $0xa8] ss:$16 sps:$4 sm:$0xff]  }
   0x5   :  { %v3407_v13 = vld [vmem:[%s4697_s1 + $0x84] ss:$16 sps:$4 sm:$0xff]   ;;  %v3409_v14 = vld [vmem:[%s4697_s1 + $0x8c] ss:$16 sps:$4 sm:$0xff]   ;;  %v3411_v15 = vld [vmem:[%s4697_s1 + $0x80] ss:$16 sps:$4 sm:$0xff]  }
   0x6   :  { %v3412_v16 = vld [vmem:[%s4697_s1 + $0x88] ss:$16 sps:$4 sm:$0xff]   ;;  %v3413_v17 = vld [vmem:[%s4697_s1 + $0x64] ss:$16 sps:$4 sm:$0xff]   ;;  %v3415_v18 = vld [vmem:[%s4697_s1 + $0x6c] ss:$16 sps:$4 sm:$0xff]  }
   0x7   :  { %247 = vmatpush1.bf16.msra.mxu0 %v3399_v7  ;;  %288 = vmatpush1.bf16.msra.mxu1 %v3400_v8  ;;  %v3417_v19 = vld [vmem:[%s4697_s1 + $0x60] ss:$16 sps:$4 sm:$0xff]   ;;  %v3418_v20 = vld [vmem:[%s4697_s1 + $0x68] ss:$16 sps:$4 sm:$0xff]   ;;  %v3419_v21 = vld [vmem:[%s4697_s1 + $0x44] ss:$16 sps:$4 sm:$0xff]  }
   0x8   :  { %248 = vmatprep.subr.bf16.mxu0 %v3401_v9  ;;  %289 = vmatprep.subr.bf16.mxu1 %v3403_v10  ;;  %v3421_v22 = vld [vmem:[%s4697_s1 + $0x4c] ss:$16 sps:$4 sm:$0xff]   ;;  %v3423_v23 = vld [vmem:[%s4697_s1 + $0x40] ss:$16 sps:$4 sm:$0xff]   ;;  %v3424_v24 = vld [vmem:[%s4697_s1 + $0x48] ss:$16 sps:$4 sm:$0xff]  }
   0x9   :  { %v3425_v25 = vld [vmem:[%s4697_s1 + $0x24] ss:$16 sps:$4 sm:$0xff]   ;;  %v3427_v26 = vld [vmem:[%s4697_s1 + $0x2c] ss:$16 sps:$4 sm:$0xff]   ;;  %v3429_v27 = vld [vmem:[%s4697_s1 + $0x20] ss:$16 sps:$4 sm:$0xff]  }
   0xa   :  { %v3430_v28 = vld [vmem:[%s4697_s1 + $0x28] ss:$16 sps:$4 sm:$0xff]   ;;  %v3431_v29 = vld [vmem:[%s4697_s1 + $0x4] ss:$16 sps:$4 sm:$0xff]   ;;  %v3433_v30 = vld [vmem:[%s4697_s1 + $0xc] ss:$16 sps:$4 sm:$0xff]  }
   0xb   :  { %249 = vmatpush1.bf16.msra.mxu0 %v3405_v11  ;;  %290 = vmatpush1.bf16.msra.mxu1 %v3406_v12  ;;  %v386_v31 = vld [vmem:[%s4699_s3 + $0x1c0] sm:$0xff]  ;;  %v3436_v36 = vld [vmem:[%s4697_s1 + $0x8] ss:$16 sps:$4 sm:$0xff]  }
   0xc   :  { %250 = vmatprep.subr.bf16.mxu0 %v3407_v13  ;;  %291 = vmatprep.subr.bf16.mxu1 %v3409_v14  ;;  %v390_v32 = vld [vmem:[%s4699_s3 + $0x1e0] sm:$0xff] }
   0xd   :  { %v514_v33 = vld [vmem:[%s4699_s3 + $0x5c0] sm:$0xff]  ;;  %v3035_v38 = vcombine.high %v386_v31, %v390_v32  ;;  %v3034_v45 = vcombine.low %v386_v31, %v390_v32 }
   0xe   :  { %v518_v34 = vld [vmem:[%s4699_s3 + $0x5e0] sm:$0xff] }
   0xf   :  { %251 = vmatpush1.bf16.msra.mxu0 %v3411_v15  ;;  %292 = vmatpush1.bf16.msra.mxu1 %v3412_v16  ;;  %v3435_v35 = vld [vmem:[%s4697_s1] ss:$16 sps:$4 sm:$0xff]   ;;  %v3163_v39 = vcombine.high %v514_v33, %v518_v34  ;;  %v3162_v46 = vcombine.low %v514_v33, %v518_v34 }
  0x10   :  { %252 = vmatprep.subr.bf16.mxu0 %v3413_v17  ;;  %293 = vmatprep.subr.bf16.mxu1 %v3415_v18  ;;  %v28_v37 = vld [vmem:[%s4696_s0] sm:$0xff] }
  0x11   :  { %v378_v40 = vld [vmem:[%s4699_s3 + $0x180] sm:$0xff]  ;;  %v29_v44 = vpack.c.bf16 %v28_v37, %v28_v37 }
  0x12   :  { %v382_v41 = vld [vmem:[%s4699_s3 + $0x1a0] sm:$0xff] }
  0x13   :  { %253 = vmatpush1.bf16.msra.mxu0 %v3417_v19  ;;  %294 = vmatpush1.bf16.msra.mxu1 %v3418_v20  ;;  %v506_v42 = vld [vmem:[%s4699_s3 + $0x580] sm:$0xff]  ;;  %v3027_v47 = vcombine.high %v378_v40, %v382_v41  ;;  %v3026_v53 = vcombine.low %v378_v40, %v382_v41 }
  0x14   :  { %254 = vmatprep.subr.bf16.mxu0 %v3419_v21  ;;  %295 = vmatprep.subr.bf16.mxu1 %v3421_v22  ;;  %v510_v43 = vld [vmem:[%s4699_s3 + $0x5a0] sm:$0xff] }
  0x15   :  { %v3155_v48 = vcombine.high %v506_v42, %v510_v43  ;;  %v370_v49 = vld [vmem:[%s4699_s3 + $0x140] sm:$0xff]  ;;  %v3154_v54 = vcombine.low %v506_v42, %v510_v43 }
  0x16   :  { %v374_v50 = vld [vmem:[%s4699_s3 + $0x160] sm:$0xff] }
  0x17   :  { %255 = vmatpush1.bf16.msra.mxu0 %v3423_v23  ;;  %296 = vmatpush1.bf16.msra.mxu1 %v3424_v24  ;;  %v498_v51 = vld [vmem:[%s4699_s3 + $0x540] sm:$0xff]  ;;  %v3019_v55 = vcombine.high %v370_v49, %v374_v50  ;;  %v3018_v61 = vcombine.low %v370_v49, %v374_v50 }
  0x18   :  { %256 = vmatprep.subr.bf16.mxu0 %v3425_v25  ;;  %297 = vmatprep.subr.bf16.mxu1 %v3427_v26  ;;  %v502_v52 = vld [vmem:[%s4699_s3 + $0x560] sm:$0xff] }
  0x19   :  { %v3147_v56 = vcombine.high %v498_v51, %v502_v52  ;;  %v362_v57 = vld [vmem:[%s4699_s3 + $0x100] sm:$0xff]  ;;  %v3146_v62 = vcombine.low %v498_v51, %v502_v52 }
  0x1a   :  { %v366_v58 = vld [vmem:[%s4699_s3 + $0x120] sm:$0xff] }
  0x1b   :  { %257 = vmatpush1.bf16.msra.mxu0 %v3429_v27  ;;  %298 = vmatpush1.bf16.msra.mxu1 %v3430_v28  ;;  %v490_v59 = vld [vmem:[%s4699_s3 + $0x500] sm:$0xff]  ;;  %v3011_v0 = vcombine.high %v362_v57, %v366_v58  ;;  %v3010_v5 = vcombine.low %v362_v57, %v366_v58 }
  0x1c   :  { %258 = vmatprep.subr.bf16.mxu0 %v3431_v29  ;;  %299 = vmatprep.subr.bf16.mxu1 %v3433_v30  ;;  %v494_v60 = vld [vmem:[%s4699_s3 + $0x520] sm:$0xff] }
  0x1d   :  { %v354_v63 = vld [vmem:[%s4699_s3 + $0xc0] sm:$0xff]  ;;  %v3139_v1 = vcombine.high %v490_v59, %v494_v60  ;;  %v3138_v6 = vcombine.low %v490_v59, %v494_v60 }
  0x1e   :  { %v358_v2 = vld [vmem:[%s4699_s3 + $0xe0] sm:$0xff] }
  0x1f   :  { %259 = vmatpush1.bf16.msra.mxu0 %v3435_v35  ;;  %300 = vmatpush1.bf16.msra.mxu1 %v3436_v36  ;;  %v482_v3 = vld [vmem:[%s4699_s3 + $0x4c0] sm:$0xff]  ;;  %v3003_v11 = vcombine.high %v354_v63, %v358_v2  ;;  %v3002_v13 = vcombine.low %v354_v63, %v358_v2 }
  0x20   :  { %1908 = vmatprep.subr.bf16.mxu0 %v3035_v38  ;;  %1949 = vmatprep.subr.bf16.mxu1 %v3163_v39  ;;  %v486_v4 = vld [vmem:[%s4699_s3 + $0x4e0] sm:$0xff] }
  0x21   :  { %v346_v7 = vld [vmem:[%s4699_s3 + $0x80] sm:$0xff]  ;;  %v3131_v12 = vcombine.high %v482_v3, %v486_v4  ;;  %v3130_v14 = vcombine.low %v482_v3, %v486_v4 }
  0x22   :  { %277 = vmatmul.mubr.bf16.vlgmr.msra.gmra.mxu0 %v29_v44  ;;  %318 = vmatmul.mubr.bf16.vlgmr.msra.gmra.mxu1 %v29_v44  ;;  %v350_v8 = vld [vmem:[%s4699_s3 + $0xa0] sm:$0xff] }
  0x23   :  { %1909 = vmatpush1.bf16.msra.mxu0 %v3034_v45  ;;  %1950 = vmatpush1.bf16.msra.mxu1 %v3162_v46  ;;  %v474_v9 = vld [vmem:[%s4699_s3 + $0x480] sm:$0xff]  ;;  %v2995_v19 = vcombine.high %v346_v7, %v350_v8  ;;  %v2994_v21 = vcombine.low %v346_v7, %v350_v8 }
  0x24   :  { %1910 = vmatprep.subr.bf16.mxu0 %v3027_v47  ;;  %1951 = vmatprep.subr.bf16.mxu1 %v3155_v48  ;;  %v478_v10 = vld [vmem:[%s4699_s3 + $0x4a0] sm:$0xff] }
  0x25   :  { %v338_v15 = vld [vmem:[%s4699_s3 + $0x40] sm:$0xff]  ;;  %v3123_v20 = vcombine.high %v474_v9, %v478_v10  ;;  %v3122_v22 = vcombine.low %v474_v9, %v478_v10 }
  0x26   :  { %v342_v16 = vld [vmem:[%s4699_s3 + $0x60] sm:$0xff] }
  0x27   :  { %1911 = vmatpush1.bf16.msra.mxu0 %v3026_v53  ;;  %1952 = vmatpush1.bf16.msra.mxu1 %v3154_v54  ;;  %v466_v17 = vld [vmem:[%s4699_s3 + $0x440] sm:$0xff]  ;;  %v2987_v27 = vcombine.high %v338_v15, %v342_v16  ;;  %v2986_v29 = vcombine.low %v338_v15, %v342_v16 }
  0x28   :  { %1912 = vmatprep.subr.bf16.mxu0 %v3019_v55  ;;  %1953 = vmatprep.subr.bf16.mxu1 %v3147_v56  ;;  %v470_v18 = vld [vmem:[%s4699_s3 + $0x460] sm:$0xff] }
  0x29   :  { %v330_v23 = vld [vmem:[%s4699_s3] sm:$0xff]  ;;  %v3115_v28 = vcombine.high %v466_v17, %v470_v18  ;;  %v3114_v30 = vcombine.low %v466_v17, %v470_v18 }
  0x2a   :  { %v334_v24 = vld [vmem:[%s4699_s3 + $0x20] sm:$0xff] }
  0x2b   :  { %1913 = vmatpush1.bf16.msra.mxu0 %v3018_v61  ;;  %1954 = vmatpush1.bf16.msra.mxu1 %v3146_v62  ;;  %v458_v25 = vld [vmem:[%s4699_s3 + $0x400] sm:$0xff]  ;;  %v2979_v35 = vcombine.high %v330_v23, %v334_v24  ;;  %v2978_v37 = vcombine.low %v330_v23, %v334_v24 }
  0x2c   :  { %1914 = vmatprep.subr.bf16.mxu0 %v3011_v0  ;;  %1955 = vmatprep.subr.bf16.mxu1 %v3139_v1  ;;  %v462_v26 = vld [vmem:[%s4699_s3 + $0x420] sm:$0xff] }
  0x2d   :  { %v450_v31 = vld [vmem:[%s4699_s3 + $0x3c0] sm:$0xff]  ;;  %v3107_v36 = vcombine.high %v458_v25, %v462_v26  ;;  %v3106_v38 = vcombine.low %v458_v25, %v462_v26 }
  0x2e   :  { %v454_v32 = vld [vmem:[%s4699_s3 + $0x3e0] sm:$0xff] }
  0x2f   :  { %1915 = vmatpush1.bf16.msra.mxu0 %v3010_v5  ;;  %1956 = vmatpush1.bf16.msra.mxu1 %v3138_v6  ;;  %v578_v33 = vld [vmem:[%s4699_s3 + $0x7c0] sm:$0xff]  ;;  %v3099_v43 = vcombine.high %v450_v31, %v454_v32  ;;  %v3098_v45 = vcombine.low %v450_v31, %v454_v32 }
  0x30   :  { %1916 = vmatprep.subr.bf16.mxu0 %v3003_v11  ;;  %1957 = vmatprep.subr.bf16.mxu1 %v3131_v12  ;;  %v582_v34 = vld [vmem:[%s4699_s3 + $0x7e0] sm:$0xff] }
  0x31   :  { %v442_v39 = vld [vmem:[%s4699_s3 + $0x380] sm:$0xff]  ;;  %v3227_v44 = vcombine.high %v578_v33, %v582_v34  ;;  %v3226_v46 = vcombine.low %v578_v33, %v582_v34 }
  0x32   :  { %v446_v40 = vld [vmem:[%s4699_s3 + $0x3a0] sm:$0xff] }
  0x33   :  { %1917 = vmatpush1.bf16.msra.mxu0 %v3002_v13  ;;  %1958 = vmatpush1.bf16.msra.mxu1 %v3130_v14  ;;  %v570_v41 = vld [vmem:[%s4699_s3 + $0x780] sm:$0xff]  ;;  %v3091_v51 = vcombine.high %v442_v39, %v446_v40  ;;  %v3090_v53 = vcombine.low %v442_v39, %v446_v40 }
  0x34   :  { %1918 = vmatprep.subr.bf16.mxu0 %v2995_v19  ;;  %1959 = vmatprep.subr.bf16.mxu1 %v3123_v20  ;;  %v574_v42 = vld [vmem:[%s4699_s3 + $0x7a0] sm:$0xff] }
  0x35   :  { %v434_v47 = vld [vmem:[%s4699_s3 + $0x340] sm:$0xff]  ;;  %v3219_v52 = vcombine.high %v570_v41, %v574_v42  ;;  %v3218_v54 = vcombine.low %v570_v41, %v574_v42 }
  0x36   :  { %v438_v48 = vld [vmem:[%s4699_s3 + $0x360] sm:$0xff] }
  0x37   :  { %1919 = vmatpush1.bf16.msra.mxu0 %v2994_v21  ;;  %1960 = vmatpush1.bf16.msra.mxu1 %v3122_v22  ;;  %v562_v49 = vld [vmem:[%s4699_s3 + $0x740] sm:$0xff]  ;;  %v3083_v59 = vcombine.high %v434_v47, %v438_v48  ;;  %v3082_v61 = vcombine.low %v434_v47, %v438_v48 }
  0x38   :  { %1920 = vmatprep.subr.bf16.mxu0 %v2987_v27  ;;  %1961 = vmatprep.subr.bf16.mxu1 %v3115_v28  ;;  %v566_v50 = vld [vmem:[%s4699_s3 + $0x760] sm:$0xff] }
  0x39   :  { %v426_v55 = vld [vmem:[%s4699_s3 + $0x300] sm:$0xff]  ;;  %v3211_v60 = vcombine.high %v562_v49, %v566_v50  ;;  %v3210_v62 = vcombine.low %v562_v49, %v566_v50 }
  0x3a   :  { %v430_v56 = vld [vmem:[%s4699_s3 + $0x320] sm:$0xff] }
  0x3b   :  { %1921 = vmatpush1.bf16.msra.mxu0 %v2986_v29  ;;  %1962 = vmatpush1.bf16.msra.mxu1 %v3114_v30  ;;  %v554_v57 = vld [vmem:[%s4699_s3 + $0x700] sm:$0xff]  ;;  %v3075_v3 = vcombine.high %v426_v55, %v430_v56  ;;  %v3074_v5 = vcombine.low %v426_v55, %v430_v56 }
  0x3c   :  { %1922 = vmatprep.subr.bf16.mxu0 %v2979_v35  ;;  %1963 = vmatprep.subr.bf16.mxu1 %v3107_v36  ;;  %v558_v58 = vld [vmem:[%s4699_s3 + $0x720] sm:$0xff] }
  0x3d   :  { %v418_v63 = vld [vmem:[%s4699_s3 + $0x2c0] sm:$0xff]  ;;  %v3203_v4 = vcombine.high %v554_v57, %v558_v58  ;;  %v3202_v6 = vcombine.low %v554_v57, %v558_v58 }
  0x3e   :  { %v422_v0 = vld [vmem:[%s4699_s3 + $0x2e0] sm:$0xff] }
  0x3f   :  { %1923 = vmatpush1.bf16.msra.mxu0 %v2978_v37  ;;  %1964 = vmatpush1.bf16.msra.mxu1 %v3106_v38  ;;  %v546_v1 = vld [vmem:[%s4699_s3 + $0x6c0] sm:$0xff]  ;;  %v3067_v11 = vcombine.high %v418_v63, %v422_v0  ;;  %v3066_v13 = vcombine.low %v418_v63, %v422_v0 }
  0x40   :  { %1924 = vmatprep.subr.bf16.mxu0 %v3099_v43  ;;  %1965 = vmatprep.subr.bf16.mxu1 %v3227_v44  ;;  %v550_v2 = vld [vmem:[%s4699_s3 + $0x6e0] sm:$0xff] }
  0x41   :  { %v410_v7 = vld [vmem:[%s4699_s3 + $0x280] sm:$0xff]  ;;  %v3195_v12 = vcombine.high %v546_v1, %v550_v2  ;;  %v3194_v14 = vcombine.low %v546_v1, %v550_v2 }
  0x42   :  { %v414_v8 = vld [vmem:[%s4699_s3 + $0x2a0] sm:$0xff] }
  0x43   :  { %1925 = vmatpush2.bf16.msra.mxu0 %v3098_v45  ;;  %1966 = vmatpush2.bf16.msra.mxu1 %v3226_v46  ;;  %v538_v9 = vld [vmem:[%s4699_s3 + $0x680] sm:$0xff]  ;;  %v3059_v19 = vcombine.high %v410_v7, %v414_v8  ;;  %v3058_v21 = vcombine.low %v410_v7, %v414_v8 }
  0x44   :  { %1926 = vmatprep.subr.bf16.mxu0 %v3091_v51  ;;  %1967 = vmatprep.subr.bf16.mxu1 %v3219_v52  ;;  %v542_v10 = vld [vmem:[%s4699_s3 + $0x6a0] sm:$0xff] }
  0x45   :  { %v402_v15 = vld [vmem:[%s4699_s3 + $0x240] sm:$0xff]  ;;  %v3187_v20 = vcombine.high %v538_v9, %v542_v10  ;;  %v3186_v22 = vcombine.low %v538_v9, %v542_v10 }
  0x46   :  { %v406_v16 = vld [vmem:[%s4699_s3 + $0x260] sm:$0xff] }
  0x47   :  { %1927 = vmatpush2.bf16.msra.mxu0 %v3090_v53  ;;  %1968 = vmatpush2.bf16.msra.mxu1 %v3218_v54  ;;  %v530_v17 = vld [vmem:[%s4699_s3 + $0x640] sm:$0xff] }
  0x48   :  { %1928 = vmatprep.subr.bf16.mxu0 %v3083_v59  ;;  %1969 = vmatprep.subr.bf16.mxu1 %v3211_v60  ;;  %v534_v18 = vld [vmem:[%s4699_s3 + $0x660] sm:$0xff] }
  0x4b   :  { %1929 = vmatpush2.bf16.msra.mxu0 %v3082_v61  ;;  %1970 = vmatpush2.bf16.msra.mxu1 %v3210_v62 }
  0x4c   :  { %1930 = vmatprep.subr.bf16.mxu0 %v3075_v3  ;;  %1971 = vmatprep.subr.bf16.mxu1 %v3203_v4 }
  0x4f   :  { %1931 = vmatpush2.bf16.msra.mxu0 %v3074_v5  ;;  %1972 = vmatpush2.bf16.msra.mxu1 %v3202_v6 }
  0x50   :  { %1932 = vmatprep.subr.bf16.mxu0 %v3067_v11  ;;  %1973 = vmatprep.subr.bf16.mxu1 %v3195_v12 }
  0x53   :  { %1933 = vmatpush2.bf16.msra.mxu0 %v3066_v13  ;;  %1974 = vmatpush2.bf16.msra.mxu1 %v3194_v14 }
  0x54   :  { %12 = vsyncpa [#allocation3], 0  ;;  %1934 = vmatprep.subr.bf16.mxu0 %v3059_v19  ;;  %1975 = vmatprep.subr.bf16.mxu1 %v3187_v20  ;;  %v3051_v23 = vcombine.high %v402_v15, %v406_v16  ;;  %v3179_v24 = vcombine.high %v530_v17, %v534_v18  ;;  %v3050_v25 = vcombine.low %v402_v15, %v406_v16  ;;  %v394_v27 = vld [vmem:[%s4699_s3 + $0x200] sm:$0xff]  ;;  %v387_v35 = vld [vmem:[%s4699_s3 + $0x1c8] sm:$0xff]  ;;  %v64_v43 = vlaneseq  ;;  %s3524_s12 = smov [#allocation2]  }
  0x55   :  { %v3178_v26 = vcombine.low %v530_v17, %v534_v18  ;;  %v398_v28 = vld [vmem:[%s4699_s3 + $0x220] sm:$0xff]  ;;  %v391_v36 = vld [vmem:[%s4699_s3 + $0x1e8] sm:$0xff]  ;;  %s2938_s0 = sshll.u32 %s3524_s12, 4  ;;  %s2939_s0 = int_to_ptr.vmem [resolvable:$true] %s2938_s0 }
  0x56   :  { %v522_v29 = vld [vmem:[%s4699_s3 + $0x600] sm:$0xff]  ;;  %v3043_v30 = vcombine.high %v394_v27, %v398_v28  ;;  %v3042_v32 = vcombine.low %v394_v27, %v398_v28  ;;  %v515_v37 = vld [vmem:[%s4699_s3 + $0x5c8] sm:$0xff]  ;;  %v3037_v38 = vcombine.high %v387_v35, %v391_v36  ;;  %v3036_v40 = vcombine.low %v387_v35, %v391_v36  ;;  %p3506_p1 = scmp.lt.s32.totalorder %s2939_s0, %s2939_s0 }
  0x57   :  { %1935 = vmatpush2.bf16.msra.mxu0 %v3058_v21  ;;  %1976 = vmatpush2.bf16.msra.mxu1 %v3186_v22  ;;  %v526_v31 = vld [vmem:[%s4699_s3 + $0x620] sm:$0xff]  ;;  %v519_v39 = vld [vmem:[%s4699_s3 + $0x5e8] sm:$0xff]  ;;  %v3868_v44 = vshrl.u32 %v64_v43, 7 }
  0x58   :  { %1936 = vmatprep.subr.bf16.mxu0 %v3051_v23  ;;  %1977 = vmatprep.subr.bf16.mxu1 %v3179_v24  ;;  %v3170_v33 = vcombine.low %v522_v29, %v526_v31  ;;  %v3171_v34 = vcombine.high %v522_v29, %v526_v31  ;;  %v3164_v41 = vcombine.low %v515_v37, %v519_v39  ;;  %v62_v47 = vld [vmem:[%s4698_s2] sm:$0xf]  ;;  %v379_v62 = vld [vmem:[%s4699_s3 + $0x188] sm:$0xff] }
  0x59   :  { %v3165_v42 = vcombine.high %v515_v37, %v519_v39  ;;  %v74_v45 = vsub.s32 2, %v3868_v44  ;;  %v66_v46 = vsub.s32 0, %v3868_v44  ;;  %v70_v48 = vsub.s32 1, %v3868_v44  ;;  %v383_v2 = vld [vmem:[%s4699_s3 + $0x1a8] sm:$0xff] }
  0x5a   :  { %v78_v49 = vsub.s32 3, %v3868_v44  ;;  %v507_v3 = vld [vmem:[%s4699_s3 + $0x588] sm:$0xff]  ;;  %v3029_v11 = vcombine.high %v379_v62, %v383_v2  ;;  %v3028_v16 = vcombine.low %v379_v62, %v383_v2 }
  0x5b   :  { %1937 = vmatpush2.bf16.msra.mxu0 %v3050_v25  ;;  %1978 = vmatpush2.bf16.msra.mxu1 %v3178_v26  ;;  %v75_v50 = vrot.slane %v62_v47, %v74_v45  ;;  %v67_v51 = vrot.slane %v62_v47, %v66_v46  ;;  %v71_v52 = vrot.slane %v62_v47, %v70_v48  ;;  %v511_v4 = vld [vmem:[%s4699_s3 + $0x5a8] sm:$0xff] }
  0x5c   :  { %1938 = vmatprep.subr.bf16.mxu0 %v3043_v30  ;;  %1979 = vmatprep.subr.bf16.mxu1 %v3171_v34  ;;  %v79_v53 = vrot.slane %v62_v47, %v78_v49  ;;  %v371_v10 = vld [vmem:[%s4699_s3 + $0x148] sm:$0xff]  ;;  %v3157_v12 = vcombine.high %v507_v3, %v511_v4  ;;  %v3156_v17 = vcombine.low %v507_v3, %v511_v4 }
  0x5d   :  { %v375_v13 = vld [vmem:[%s4699_s3 + $0x168] sm:$0xff] }
  0x5e   :  { %v499_v14 = vld [vmem:[%s4699_s3 + $0x548] sm:$0xff]  ;;  %v3021_v18 = vcombine.high %v371_v10, %v375_v13  ;;  %v3020_v24 = vcombine.low %v371_v10, %v375_v13 }
  0x5f   :  { %1939 = vmatpush2.bf16.msra.mxu0 %v3042_v32  ;;  %1980 = vmatpush2.bf16.msra.mxu1 %v3170_v33  ;;  %v503_v15 = vld [vmem:[%s4699_s3 + $0x568] sm:$0xff] }
  0x60   :  { %1990 = vmatprep.subr.bf16.mxu0 %v3037_v38  ;;  %2031 = vmatprep.subr.bf16.mxu1 %v3165_v42  ;;  %v3149_v19 = vcombine.high %v499_v14, %v503_v15  ;;  %v363_v20 = vld [vmem:[%s4699_s3 + $0x108] sm:$0xff]  ;;  %v3148_v25 = vcombine.low %v499_v14, %v503_v15 }
  0x61   :  { %v367_v21 = vld [vmem:[%s4699_s3 + $0x128] sm:$0xff] }
  0x62   :  { %v491_v22 = vld [vmem:[%s4699_s3 + $0x508] sm:$0xff]  ;;  %v3013_v26 = vcombine.high %v363_v20, %v367_v21  ;;  %v3012_v32 = vcombine.low %v363_v20, %v367_v21 }
  0x63   :  { %v495_v23 = vld [vmem:[%s4699_s3 + $0x528] sm:$0xff] }
  0x64   :  { %v3141_v27 = vcombine.high %v491_v22, %v495_v23  ;;  %v355_v28 = vld [vmem:[%s4699_s3 + $0xc8] sm:$0xff]  ;;  %v3140_v33 = vcombine.low %v491_v22, %v495_v23 }
  0x65   :  { %v359_v29 = vld [vmem:[%s4699_s3 + $0xe8] sm:$0xff] }
  0x66   :  { %v483_v30 = vld [vmem:[%s4699_s3 + $0x4c8] sm:$0xff]  ;;  %v3005_v34 = vcombine.high %v355_v28, %v359_v29 }
  0x67   :  { %v487_v31 = vld [vmem:[%s4699_s3 + $0x4e8] sm:$0xff] }
  0x68   :  { %v3133_v35 = vcombine.high %v483_v30, %v487_v31  ;;  %v347_v36 = vld [vmem:[%s4699_s3 + $0x88] sm:$0xff] }
  0x69   :  { %v351_v37 = vld [vmem:[%s4699_s3 + $0xa8] sm:$0xff] }
  0x6a   :  { %v475_v38 = vld [vmem:[%s4699_s3 + $0x488] sm:$0xff]  ;;  %v2997_v42 = vcombine.high %v347_v36, %v351_v37 }
  0x6b   :  { %v479_v39 = vld [vmem:[%s4699_s3 + $0x4a8] sm:$0xff] }
  0x6c   :  { %v3125_v43 = vcombine.high %v475_v38, %v479_v39  ;;  %v339_v47 = vld [vmem:[%s4699_s3 + $0x48] sm:$0xff] }
  0x6d   :  { %v451_v2 = vld [vmem:[%s4699_s3 + $0x3c8] sm:$0xff] }
  0x6e   :  { %v455_v3 = vld [vmem:[%s4699_s3 + $0x3e8] sm:$0xff] }
  0x6f   :  { %v579_v4 = vld [vmem:[%s4699_s3 + $0x7c8] sm:$0xff] }
  0x70   :  { %v443_v13 = vld [vmem:[%s4699_s3 + $0x388] sm:$0xff] }
  0x71   :  { %v447_v14 = vld [vmem:[%s4699_s3 + $0x3a8] sm:$0xff] }
  0x72   :  { %v571_v15 = vld [vmem:[%s4699_s3 + $0x788] sm:$0xff] }
  0x73   :  { %v435_v21 = vld [vmem:[%s4699_s3 + $0x348] sm:$0xff] }
  0x74   :  { %v439_v22 = vld [vmem:[%s4699_s3 + $0x368] sm:$0xff] }
  0x75   :  { %v563_v23 = vld [vmem:[%s4699_s3 + $0x748] sm:$0xff] }
  0xe2   :  { %v278_v54 = vpop.f32.mrf.mxu0  ;;  %v319_v55 = vpop.f32.mrf.mxu1 }
  0xe3   :  { %v320_v56 = vadd.f32 %v319_v55, %v75_v50  ;;  %v279_v57 = vadd.f32 %v278_v54, %v67_v51  ;;  %v343_v50 = vld [vmem:[%s4699_s3 + $0x68] sm:$0xff]  ;;  %v3124_v54 = vcombine.low %v475_v38, %v479_v39 }
  0xe4   :  { %v280_v58 = vpop.f32.mrf.mxu0  ;;  %v321_v59 = vpop.f32.mrf.mxu1  ;;  %v467_v51 = vld [vmem:[%s4699_s3 + $0x448] sm:$0xff]  ;;  %v2989_v55 = vcombine.high %v339_v47, %v343_v50 }
  0xe5   :  { %v281_v60 = vadd.f32 %v280_v58, %v71_v52  ;;  %v322_v61 = vadd.f32 %v321_v59, %v79_v53  ;;  %v3888_v63 = vpack.c.bf16 %v320_v56, %v320_v56  ;;  %v3903_v7 = vpack.c.bf16 %v279_v57, %v279_v57  ;;  %v471_v52 = vld [vmem:[%s4699_s3 + $0x468] sm:$0xff] }
  0xe6   :  { %v282_v0 = vpop.f32.mrf.mxu0  ;;  %v323_v1 = vpop.f32.mrf.mxu1  ;;  %v2996_v53 = vcombine.low %v347_v36, %v351_v37  ;;  %v3117_v56 = vcombine.high %v467_v51, %v471_v52  ;;  %v331_v57 = vld [vmem:[%s4699_s3 + $0x8] sm:$0xff]  ;;  %v3116_v62 = vcombine.low %v467_v51, %v471_v52 }
  0xe7   :  { %v3899_v5 = vpack.c.bf16 %v281_v60, %v281_v60  ;;  %v3901_v6 = vpack.c.bf16 %v322_v61, %v322_v61  ;;  %v335_v58 = vld [vmem:[%s4699_s3 + $0x28] sm:$0xff]  ;;  %v2988_v61 = vcombine.low %v339_v47, %v343_v50 }
  0xe8   :  { %v283_v8 = vpop.f32.mrf.mxu0  ;;  %v324_v9 = vpop.f32.mrf.mxu1  ;;  %v459_v59 = vld [vmem:[%s4699_s3 + $0x408] sm:$0xff]  ;;  %v2981_v0 = vcombine.high %v331_v57, %v335_v58 }
  0xe9   :  { %1940 = vmatprep.mubr.bf16.mxu0 %v3899_v5  ;;  %1981 = vmatprep.mubr.bf16.mxu1 %v3901_v6  ;;  %v463_v60 = vld [vmem:[%s4699_s3 + $0x428] sm:$0xff]  ;;  %v2980_v9 = vcombine.low %v331_v57, %v335_v58 }
  0xea   :  { %1941 = vmatmul.mubr.bf16.vlgmr.msra.gmra.mxu0 %v3903_v7  ;;  %1982 = vmatmul.mubr.bf16.vlgmr.msra.gmra.mxu1 %v3888_v63  ;;  %v3109_v1 = vcombine.high %v459_v59, %v463_v60  ;;  %v583_v8 = vld [vmem:[%s4699_s3 + $0x7e8] sm:$0xff]  ;;  %v3108_v10 = vcombine.low %v459_v59, %v463_v60 }
  0xeb   :  { %1991 = vmatpush1.bf16.msra.mxu0 %v3036_v40  ;;  %2032 = vmatpush1.bf16.msra.mxu1 %v3164_v41  ;;  %v3004_v40 = vcombine.low %v355_v28, %v359_v29  ;;  %v3132_v41 = vcombine.low %v483_v30, %v487_v31  ;;  %v427_v29 = vld [vmem:[%s4699_s3 + $0x308] sm:$0xff] }
  0xec   :  { %2022 = vmatprep.mubr.bf16.mxu0 %v3899_v5  ;;  %2063 = vmatprep.mubr.bf16.mxu1 %v3901_v6  ;;  %v431_v30 = vld [vmem:[%s4699_s3 + $0x328] sm:$0xff] }
  0xed   :  { %1992 = vmatprep.subr.bf16.mxu0 %v3029_v11  ;;  %2033 = vmatprep.subr.bf16.mxu1 %v3157_v12  ;;  %v3101_v11 = vcombine.high %v451_v2, %v455_v3  ;;  %v3229_v12 = vcombine.high %v579_v4, %v583_v8  ;;  %v555_v31 = vld [vmem:[%s4699_s3 + $0x708] sm:$0xff] }
  0xee   :  { %v419_v37 = vld [vmem:[%s4699_s3 + $0x2c8] sm:$0xff] }
  0xef   :  { %1993 = vmatpush1.bf16.msra.mxu0 %v3028_v16  ;;  %2034 = vmatpush1.bf16.msra.mxu1 %v3156_v17  ;;  %v575_v16 = vld [vmem:[%s4699_s3 + $0x7a8] sm:$0xff]  ;;  %v3100_v17 = vcombine.low %v451_v2, %v455_v3 }
  0xf0   :  { %1994 = vmatprep.subr.bf16.mxu0 %v3021_v18  ;;  %2035 = vmatprep.subr.bf16.mxu1 %v3149_v19  ;;  %v3228_v18 = vcombine.low %v579_v4, %v583_v8  ;;  %v3093_v19 = vcombine.high %v443_v13, %v447_v14  ;;  %v3221_v20 = vcombine.high %v571_v15, %v575_v16  ;;  %v423_v38 = vld [vmem:[%s4699_s3 + $0x2e8] sm:$0xff] }
  0xf1   :  { %v547_v39 = vld [vmem:[%s4699_s3 + $0x6c8] sm:$0xff] }
  0xf2   :  { %v411_v50 = vld [vmem:[%s4699_s3 + $0x288] sm:$0xff] }
  0xf3   :  { %1995 = vmatpush1.bf16.msra.mxu0 %v3020_v24  ;;  %2036 = vmatpush1.bf16.msra.mxu1 %v3148_v25  ;;  %v567_v24 = vld [vmem:[%s4699_s3 + $0x768] sm:$0xff]  ;;  %v3092_v25 = vcombine.low %v443_v13, %v447_v14  ;;  %v388_v14 = vld [vmem:[%s4699_s3 + $0x1d0] sm:$0xff] }
  0xf4   :  { %1996 = vmatprep.subr.bf16.mxu0 %v3013_v26  ;;  %2037 = vmatprep.subr.bf16.mxu1 %v3141_v27  ;;  %v3220_v26 = vcombine.low %v571_v15, %v575_v16  ;;  %v3085_v27 = vcombine.high %v435_v21, %v439_v22  ;;  %v3213_v28 = vcombine.high %v563_v23, %v567_v24  ;;  %v415_v51 = vld [vmem:[%s4699_s3 + $0x2a8] sm:$0xff]  ;;  %v392_v15 = vld [vmem:[%s4699_s3 + $0x1f0] sm:$0xff] }
  0xf5   :  { %v539_v52 = vld [vmem:[%s4699_s3 + $0x688] sm:$0xff]  ;;  %v516_v16 = vld [vmem:[%s4699_s3 + $0x5d0] sm:$0xff] }
  0xf6   :  { %v403_v58 = vld [vmem:[%s4699_s3 + $0x248] sm:$0xff] }
  0xf7   :  { %1997 = vmatpush1.bf16.msra.mxu0 %v3012_v32  ;;  %2038 = vmatpush1.bf16.msra.mxu1 %v3140_v33  ;;  %v559_v32 = vld [vmem:[%s4699_s3 + $0x728] sm:$0xff]  ;;  %v3084_v33 = vcombine.low %v435_v21, %v439_v22  ;;  %v380_v22 = vld [vmem:[%s4699_s3 + $0x190] sm:$0xff] }
  0xf8   :  { %1998 = vmatprep.subr.bf16.mxu0 %v3005_v34  ;;  %2039 = vmatprep.subr.bf16.mxu1 %v3133_v35  ;;  %v3212_v34 = vcombine.low %v563_v23, %v567_v24  ;;  %v3077_v35 = vcombine.high %v427_v29, %v431_v30  ;;  %v3205_v36 = vcombine.high %v555_v31, %v559_v32  ;;  %v407_v59 = vld [vmem:[%s4699_s3 + $0x268] sm:$0xff]  ;;  %v384_v23 = vld [vmem:[%s4699_s3 + $0x1b0] sm:$0xff] }
  0xf9   :  { %v531_v60 = vld [vmem:[%s4699_s3 + $0x648] sm:$0xff]  ;;  %v508_v24 = vld [vmem:[%s4699_s3 + $0x590] sm:$0xff] }
  0xfa   :  { %v395_v3 = vld [vmem:[%s4699_s3 + $0x208] sm:$0xff] }
  0xfb   :  { %1999 = vmatpush1.bf16.msra.mxu0 %v3004_v40  ;;  %2040 = vmatpush1.bf16.msra.mxu1 %v3132_v41  ;;  %v551_v40 = vld [vmem:[%s4699_s3 + $0x6e8] sm:$0xff]  ;;  %v3076_v41 = vcombine.low %v427_v29, %v431_v30  ;;  %v372_v30 = vld [vmem:[%s4699_s3 + $0x150] sm:$0xff] }
  0xfc   :  { %2000 = vmatprep.subr.bf16.mxu0 %v2997_v42  ;;  %2041 = vmatprep.subr.bf16.mxu1 %v3125_v43  ;;  %v3204_v42 = vcombine.low %v555_v31, %v559_v32  ;;  %v3069_v43 = vcombine.high %v419_v37, %v423_v38  ;;  %v3197_v47 = vcombine.high %v547_v39, %v551_v40  ;;  %v399_v4 = vld [vmem:[%s4699_s3 + $0x228] sm:$0xff]  ;;  %v376_v31 = vld [vmem:[%s4699_s3 + $0x170] sm:$0xff] }
  0xfd   :  { %v523_v8 = vld [vmem:[%s4699_s3 + $0x608] sm:$0xff]  ;;  %v500_v32 = vld [vmem:[%s4699_s3 + $0x550] sm:$0xff] }
  0xff   :  { %2001 = vmatpush1.bf16.msra.mxu0 %v2996_v53  ;;  %2042 = vmatpush1.bf16.msra.mxu1 %v3124_v54  ;;  %v543_v53 = vld [vmem:[%s4699_s3 + $0x6a8] sm:$0xff]  ;;  %v3068_v54 = vcombine.low %v419_v37, %v423_v38  ;;  %v364_v38 = vld [vmem:[%s4699_s3 + $0x110] sm:$0xff] }
 0x100   :  { %2002 = vmatprep.subr.bf16.mxu0 %v2989_v55  ;;  %2043 = vmatprep.subr.bf16.mxu1 %v3117_v56  ;;  %v3196_v55 = vcombine.low %v547_v39, %v551_v40  ;;  %v3061_v56 = vcombine.high %v411_v50, %v415_v51  ;;  %v3189_v57 = vcombine.high %v539_v52, %v543_v53  ;;  %v368_v39 = vld [vmem:[%s4699_s3 + $0x130] sm:$0xff] }
 0x101   :  { %v492_v40 = vld [vmem:[%s4699_s3 + $0x510] sm:$0xff] }
 0x103   :  { %2003 = vmatpush1.bf16.msra.mxu0 %v2988_v61  ;;  %2044 = vmatpush1.bf16.msra.mxu1 %v3116_v62  ;;  %v535_v61 = vld [vmem:[%s4699_s3 + $0x668] sm:$0xff]  ;;  %v3060_v62 = vcombine.low %v411_v50, %v415_v51  ;;  %v356_v51 = vld [vmem:[%s4699_s3 + $0xd0] sm:$0xff] }
 0x104   :  { %2004 = vmatprep.subr.bf16.mxu0 %v2981_v0  ;;  %2045 = vmatprep.subr.bf16.mxu1 %v3109_v1  ;;  %v3188_v0 = vcombine.low %v539_v52, %v543_v53  ;;  %v3053_v1 = vcombine.high %v403_v58, %v407_v59  ;;  %v3181_v2 = vcombine.high %v531_v60, %v535_v61  ;;  %v360_v52 = vld [vmem:[%s4699_s3 + $0xf0] sm:$0xff] }
 0x105   :  { %v484_v53 = vld [vmem:[%s4699_s3 + $0x4d0] sm:$0xff] }
 0x107   :  { %2005 = vmatpush1.bf16.msra.mxu0 %v2980_v9  ;;  %2046 = vmatpush1.bf16.msra.mxu1 %v3108_v10  ;;  %v527_v9 = vld [vmem:[%s4699_s3 + $0x628] sm:$0xff]  ;;  %v3052_v10 = vcombine.low %v403_v58, %v407_v59  ;;  %v348_v59 = vld [vmem:[%s4699_s3 + $0x90] sm:$0xff] }
 0x108   :  { %2006 = vmatprep.subr.bf16.mxu0 %v3101_v11  ;;  %2047 = vmatprep.subr.bf16.mxu1 %v3229_v12  ;;  %v3180_v11 = vcombine.low %v531_v60, %v535_v61  ;;  %v3045_v12 = vcombine.high %v395_v3, %v399_v4  ;;  %v3173_v13 = vcombine.high %v523_v8, %v527_v9  ;;  %v352_v60 = vld [vmem:[%s4699_s3 + $0xb0] sm:$0xff] }
 0x109   :  { %v476_v61 = vld [vmem:[%s4699_s3 + $0x490] sm:$0xff] }
 0x10b   :  { %2007 = vmatpush2.bf16.msra.mxu0 %v3100_v17  ;;  %2048 = vmatpush2.bf16.msra.mxu1 %v3228_v18  ;;  %v520_v17 = vld [vmem:[%s4699_s3 + $0x5f0] sm:$0xff]  ;;  %v3044_v18 = vcombine.low %v395_v3, %v399_v4 }
 0x10c   :  { %2008 = vmatprep.subr.bf16.mxu0 %v3093_v19  ;;  %2049 = vmatprep.subr.bf16.mxu1 %v3221_v20  ;;  %v3172_v19 = vcombine.low %v523_v8, %v527_v9  ;;  %v3039_v20 = vcombine.high %v388_v14, %v392_v15  ;;  %v3167_v21 = vcombine.high %v516_v16, %v520_v17  ;;  %v340_v4 = vld [vmem:[%s4699_s3 + $0x50] sm:$0xff] }
 0x10d   :  { %v344_v8 = vld [vmem:[%s4699_s3 + $0x70] sm:$0xff] }
 0x10e   :  { %v468_v9 = vld [vmem:[%s4699_s3 + $0x450] sm:$0xff] }
 0x10f   :  { %2009 = vmatpush2.bf16.msra.mxu0 %v3092_v25  ;;  %2050 = vmatpush2.bf16.msra.mxu1 %v3220_v26  ;;  %v512_v25 = vld [vmem:[%s4699_s3 + $0x5b0] sm:$0xff]  ;;  %v3038_v26 = vcombine.low %v388_v14, %v392_v15 }
 0x110   :  { %2010 = vmatprep.subr.bf16.mxu0 %v3085_v27  ;;  %2051 = vmatprep.subr.bf16.mxu1 %v3213_v28  ;;  %v3166_v27 = vcombine.low %v516_v16, %v520_v17  ;;  %v3031_v28 = vcombine.high %v380_v22, %v384_v23  ;;  %v3159_v29 = vcombine.high %v508_v24, %v512_v25  ;;  %v332_v15 = vld [vmem:[%s4699_s3 + $0x10] sm:$0xff] }
 0x111   :  { %v336_v16 = vld [vmem:[%s4699_s3 + $0x30] sm:$0xff] }
 0x112   :  { %v460_v17 = vld [vmem:[%s4699_s3 + $0x410] sm:$0xff] }
 0x113   :  { %2011 = vmatpush2.bf16.msra.mxu0 %v3084_v33  ;;  %2052 = vmatpush2.bf16.msra.mxu1 %v3212_v34  ;;  %v504_v33 = vld [vmem:[%s4699_s3 + $0x570] sm:$0xff]  ;;  %v3030_v34 = vcombine.low %v380_v22, %v384_v23 }
 0x114   :  { %2012 = vmatprep.subr.bf16.mxu0 %v3077_v35  ;;  %2053 = vmatprep.subr.bf16.mxu1 %v3205_v36  ;;  %v3158_v35 = vcombine.low %v508_v24, %v512_v25  ;;  %v3023_v36 = vcombine.high %v372_v30, %v376_v31  ;;  %v3151_v37 = vcombine.high %v500_v32, %v504_v33  ;;  %v452_v23 = vld [vmem:[%s4699_s3 + $0x3d0] sm:$0xff] }
 0x115   :  { %v456_v24 = vld [vmem:[%s4699_s3 + $0x3f0] sm:$0xff] }
 0x116   :  { %v580_v25 = vld [vmem:[%s4699_s3 + $0x7d0] sm:$0xff] }
 0x117   :  { %2013 = vmatpush2.bf16.msra.mxu0 %v3076_v41  ;;  %2054 = vmatpush2.bf16.msra.mxu1 %v3204_v42  ;;  %v496_v41 = vld [vmem:[%s4699_s3 + $0x530] sm:$0xff]  ;;  %v3022_v42 = vcombine.low %v372_v30, %v376_v31 }
 0x118   :  { %2014 = vmatprep.subr.bf16.mxu0 %v3069_v43  ;;  %2055 = vmatprep.subr.bf16.mxu1 %v3197_v47  ;;  %v3150_v43 = vcombine.low %v500_v32, %v504_v33  ;;  %v3015_v47 = vcombine.high %v364_v38, %v368_v39  ;;  %v3143_v50 = vcombine.high %v492_v40, %v496_v41  ;;  %v444_v31 = vld [vmem:[%s4699_s3 + $0x390] sm:$0xff] }
 0x119   :  { %v448_v32 = vld [vmem:[%s4699_s3 + $0x3b0] sm:$0xff] }
 0x11a   :  { %v572_v33 = vld [vmem:[%s4699_s3 + $0x790] sm:$0xff] }
 0x11b   :  { %2015 = vmatpush2.bf16.msra.mxu0 %v3068_v54  ;;  %2056 = vmatpush2.bf16.msra.mxu1 %v3196_v55  ;;  %v488_v54 = vld [vmem:[%s4699_s3 + $0x4f0] sm:$0xff]  ;;  %v3014_v55 = vcombine.low %v364_v38, %v368_v39 }
 0x11c   :  { %2016 = vmatprep.subr.bf16.mxu0 %v3061_v56  ;;  %2057 = vmatprep.subr.bf16.mxu1 %v3189_v57  ;;  %v3142_v56 = vcombine.low %v492_v40, %v496_v41  ;;  %v3007_v57 = vcombine.high %v356_v51, %v360_v52  ;;  %v3135_v58 = vcombine.high %v484_v53, %v488_v54  ;;  %v436_v39 = vld [vmem:[%s4699_s3 + $0x350] sm:$0xff] }
 0x11d   :  { %v440_v40 = vld [vmem:[%s4699_s3 + $0x370] sm:$0xff] }
 0x11e   :  { %v564_v41 = vld [vmem:[%s4699_s3 + $0x750] sm:$0xff] }
 0x11f   :  { %2017 = vmatpush2.bf16.msra.mxu0 %v3060_v62  ;;  %2058 = vmatpush2.bf16.msra.mxu1 %v3188_v0  ;;  %v480_v62 = vld [vmem:[%s4699_s3 + $0x4b0] sm:$0xff]  ;;  %v3006_v0 = vcombine.low %v356_v51, %v360_v52 }
 0x120   :  { %2018 = vmatprep.subr.bf16.mxu0 %v3053_v1  ;;  %2059 = vmatprep.subr.bf16.mxu1 %v3181_v2  ;;  %v3134_v1 = vcombine.low %v484_v53, %v488_v54  ;;  %v2999_v2 = vcombine.high %v348_v59, %v352_v60  ;;  %v3127_v3 = vcombine.high %v476_v61, %v480_v62  ;;  %v428_v52 = vld [vmem:[%s4699_s3 + $0x310] sm:$0xff] }
 0x121   :  { %v432_v53 = vld [vmem:[%s4699_s3 + $0x330] sm:$0xff] }
 0x122   :  { %v556_v54 = vld [vmem:[%s4699_s3 + $0x710] sm:$0xff] }
 0x123   :  { %2019 = vmatpush2.bf16.msra.mxu0 %v3052_v10  ;;  %2060 = vmatpush2.bf16.msra.mxu1 %v3180_v11  ;;  %v472_v10 = vld [vmem:[%s4699_s3 + $0x470] sm:$0xff]  ;;  %v2998_v11 = vcombine.low %v348_v59, %v352_v60 }
 0x124   :  { %2020 = vmatprep.subr.bf16.mxu0 %v3045_v12  ;;  %2061 = vmatprep.subr.bf16.mxu1 %v3173_v13  ;;  %v3126_v12 = vcombine.low %v476_v61, %v480_v62  ;;  %v2991_v13 = vcombine.high %v340_v4, %v344_v8  ;;  %v3119_v14 = vcombine.high %v468_v9, %v472_v10  ;;  %v420_v60 = vld [vmem:[%s4699_s3 + $0x2d0] sm:$0xff] }
 0x125   :  { %v424_v61 = vld [vmem:[%s4699_s3 + $0x2f0] sm:$0xff] }
 0x126   :  { %v548_v62 = vld [vmem:[%s4699_s3 + $0x6d0] sm:$0xff] }
 0x127   :  { %2021 = vmatpush2.bf16.msra.mxu0 %v3044_v18  ;;  %2062 = vmatpush2.bf16.msra.mxu1 %v3172_v19  ;;  %v464_v18 = vld [vmem:[%s4699_s3 + $0x430] sm:$0xff]  ;;  %v2990_v19 = vcombine.low %v340_v4, %v344_v8 }
 0x128   :  { %2072 = vmatprep.subr.bf16.mxu0 %v3039_v20  ;;  %2113 = vmatprep.subr.bf16.mxu1 %v3167_v21  ;;  %v3118_v20 = vcombine.low %v468_v9, %v472_v10  ;;  %v2983_v21 = vcombine.high %v332_v15, %v336_v16  ;;  %v3111_v22 = vcombine.high %v460_v17, %v464_v18  ;;  %v412_v8 = vld [vmem:[%s4699_s3 + $0x290] sm:$0xff] }
 0x129   :  { %v416_v9 = vld [vmem:[%s4699_s3 + $0x2b0] sm:$0xff] }
 0x12a   :  { %2023 = vmatmul.mubr.bf16.vlgmr.msra.gmra.mxu0 %v3903_v7  ;;  %2064 = vmatmul.mubr.bf16.vlgmr.msra.gmra.mxu1 %v3888_v63  ;;  %v540_v10 = vld [vmem:[%s4699_s3 + $0x690] sm:$0xff] }
 0x12b   :  { %2073 = vmatpush1.bf16.msra.mxu0 %v3038_v26  ;;  %2104 = vmatprep.mubr.bf16.mxu0 %v3899_v5  ;;  %v584_v26 = vld [vmem:[%s4699_s3 + $0x7f0] sm:$0xff] }
 0x12c   :  { %2114 = vmatpush1.bf16.msra.mxu1 %v3166_v27  ;;  %2145 = vmatprep.mubr.bf16.mxu1 %v3901_v6  ;;  %v2982_v27 = vcombine.low %v332_v15, %v336_v16  ;;  %v3231_v30 = vcombine.high %v580_v25, %v584_v26  ;;  %v404_v16 = vld [vmem:[%s4699_s3 + $0x250] sm:$0xff] }
 0x12d   :  { %2074 = vmatprep.subr.bf16.mxu0 %v3031_v28  ;;  %2115 = vmatprep.subr.bf16.mxu1 %v3159_v29  ;;  %v3110_v28 = vcombine.low %v460_v17, %v464_v18  ;;  %v3103_v29 = vcombine.high %v452_v23, %v456_v24  ;;  %v408_v17 = vld [vmem:[%s4699_s3 + $0x270] sm:$0xff] }
 0x12e   :  { %v532_v18 = vld [vmem:[%s4699_s3 + $0x650] sm:$0xff] }
 0x12f   :  { %2075 = vmatpush1.bf16.msra.mxu0 %v3030_v34  ;;  %v576_v34 = vld [vmem:[%s4699_s3 + $0x7b0] sm:$0xff] }
 0x130   :  { %2116 = vmatpush1.bf16.msra.mxu1 %v3158_v35  ;;  %2076 = vmatprep.subr.bf16.mxu0 %v3023_v36  ;;  %v3102_v35 = vcombine.low %v452_v23, %v456_v24  ;;  %v3230_v36 = vcombine.low %v580_v25, %v584_v26  ;;  %v3223_v38 = vcombine.high %v572_v33, %v576_v34  ;;  %v396_v24 = vld [vmem:[%s4699_s3 + $0x210] sm:$0xff] }
 0x131   :  { %2117 = vmatprep.subr.bf16.mxu1 %v3151_v37  ;;  %v3095_v37 = vcombine.high %v444_v31, %v448_v32  ;;  %v400_v25 = vld [vmem:[%s4699_s3 + $0x230] sm:$0xff] }
 0x132   :  { %v524_v26 = vld [vmem:[%s4699_s3 + $0x610] sm:$0xff] }
 0x133   :  { %2077 = vmatpush1.bf16.msra.mxu0 %v3022_v42  ;;  %v568_v42 = vld [vmem:[%s4699_s3 + $0x770] sm:$0xff] }
 0x134   :  { %2118 = vmatpush1.bf16.msra.mxu1 %v3150_v43  ;;  %2078 = vmatprep.subr.bf16.mxu0 %v3015_v47  ;;  %v3094_v43 = vcombine.low %v444_v31, %v448_v32  ;;  %v3222_v47 = vcombine.low %v572_v33, %v576_v34  ;;  %v3215_v51 = vcombine.high %v564_v41, %v568_v42  ;;  %v389_v32 = vld [vmem:[%s4699_s3 + $0x1d8] sm:$0xff] }
 0x135   :  { %2119 = vmatprep.subr.bf16.mxu1 %v3143_v50  ;;  %v3087_v50 = vcombine.high %v436_v39, %v440_v40  ;;  %v393_v33 = vld [vmem:[%s4699_s3 + $0x1f8] sm:$0xff] }
 0x136   :  { %v517_v34 = vld [vmem:[%s4699_s3 + $0x5d8] sm:$0xff] }
 0x137   :  { %2079 = vmatpush1.bf16.msra.mxu0 %v3014_v55  ;;  %v560_v55 = vld [vmem:[%s4699_s3 + $0x730] sm:$0xff] }
 0x138   :  { %2120 = vmatpush1.bf16.msra.mxu1 %v3142_v56  ;;  %2080 = vmatprep.subr.bf16.mxu0 %v3007_v57  ;;  %v3086_v56 = vcombine.low %v436_v39, %v440_v40  ;;  %v3214_v57 = vcombine.low %v564_v41, %v568_v42  ;;  %v3207_v59 = vcombine.high %v556_v54, %v560_v55  ;;  %v381_v40 = vld [vmem:[%s4699_s3 + $0x198] sm:$0xff] }
 0x139   :  { %2121 = vmatprep.subr.bf16.mxu1 %v3135_v58  ;;  %v3079_v58 = vcombine.high %v428_v52, %v432_v53  ;;  %v385_v41 = vld [vmem:[%s4699_s3 + $0x1b8] sm:$0xff]  ;;  %v3040_v42 = vcombine.low %v389_v32, %v393_v33 }
 0x13b   :  { %2081 = vmatpush1.bf16.msra.mxu0 %v3006_v0  ;;  %v552_v0 = vld [vmem:[%s4699_s3 + $0x6f0] sm:$0xff] }
 0x13c   :  { %2122 = vmatpush1.bf16.msra.mxu1 %v3134_v1  ;;  %2082 = vmatprep.subr.bf16.mxu0 %v2999_v2  ;;  %v3078_v1 = vcombine.low %v428_v52, %v432_v53  ;;  %v3206_v2 = vcombine.low %v556_v54, %v560_v55  ;;  %v3199_v4 = vcombine.high %v548_v62, %v552_v0  ;;  %v373_v52 = vld [vmem:[%s4699_s3 + $0x158] sm:$0xff] }
 0x13d   :  { %2123 = vmatprep.subr.bf16.mxu1 %v3127_v3  ;;  %v3071_v3 = vcombine.high %v420_v60, %v424_v61  ;;  %v377_v53 = vld [vmem:[%s4699_s3 + $0x178] sm:$0xff] }
 0x13e   :  { %v501_v55 = vld [vmem:[%s4699_s3 + $0x558] sm:$0xff] }
 0x13f   :  { %2083 = vmatpush1.bf16.msra.mxu0 %v2998_v11  ;;  %v544_v11 = vld [vmem:[%s4699_s3 + $0x6b0] sm:$0xff] }
 0x140   :  { %2124 = vmatpush1.bf16.msra.mxu1 %v3126_v12  ;;  %2084 = vmatprep.subr.bf16.mxu0 %v2991_v13  ;;  %v3070_v12 = vcombine.low %v420_v60, %v424_v61  ;;  %v3198_v13 = vcombine.low %v548_v62, %v552_v0  ;;  %v3191_v15 = vcombine.high %v540_v10, %v544_v11  ;;  %v365_v61 = vld [vmem:[%s4699_s3 + $0x118] sm:$0xff] }
 0x141   :  { %2125 = vmatprep.subr.bf16.mxu1 %v3119_v14  ;;  %v3063_v14 = vcombine.high %v412_v8, %v416_v9  ;;  %v369_v62 = vld [vmem:[%s4699_s3 + $0x138] sm:$0xff] }
 0x142   :  { %v497_v0 = vld [vmem:[%s4699_s3 + $0x538] sm:$0xff] }
 0x143   :  { %2085 = vmatpush1.bf16.msra.mxu0 %v2990_v19  ;;  %v536_v19 = vld [vmem:[%s4699_s3 + $0x670] sm:$0xff] }
 0x144   :  { %2126 = vmatpush1.bf16.msra.mxu1 %v3118_v20  ;;  %2086 = vmatprep.subr.bf16.mxu0 %v2983_v21  ;;  %v3062_v20 = vcombine.low %v412_v8, %v416_v9  ;;  %v3190_v21 = vcombine.low %v540_v10, %v544_v11  ;;  %v3183_v23 = vcombine.high %v532_v18, %v536_v19  ;;  %v361_v8 = vld [vmem:[%s4699_s3 + $0xf8] sm:$0xff] }
 0x145   :  { %2127 = vmatprep.subr.bf16.mxu1 %v3111_v22  ;;  %v3055_v22 = vcombine.high %v404_v16, %v408_v17  ;;  %v485_v9 = vld [vmem:[%s4699_s3 + $0x4d8] sm:$0xff]  ;;  %v3016_v11 = vcombine.low %v365_v61, %v369_v62 }
 0x146   :  { %v489_v10 = vld [vmem:[%s4699_s3 + $0x4f8] sm:$0xff] }
 0x147   :  { %2087 = vmatpush1.bf16.msra.mxu0 %v2982_v27  ;;  %v528_v27 = vld [vmem:[%s4699_s3 + $0x630] sm:$0xff] }
 0x148   :  { %2128 = vmatpush1.bf16.msra.mxu1 %v3110_v28  ;;  %2088 = vmatprep.subr.bf16.mxu0 %v3103_v29  ;;  %v3054_v28 = vcombine.low %v404_v16, %v408_v17  ;;  %v3182_v29 = vcombine.low %v532_v18, %v536_v19  ;;  %v3175_v31 = vcombine.high %v524_v26, %v528_v27  ;;  %v353_v16 = vld [vmem:[%s4699_s3 + $0xb8] sm:$0xff] }
 0x149   :  { %2129 = vmatprep.subr.bf16.mxu1 %v3231_v30  ;;  %v3047_v30 = vcombine.high %v396_v24, %v400_v25  ;;  %v477_v17 = vld [vmem:[%s4699_s3 + $0x498] sm:$0xff] }
 0x14a   :  { %v481_v18 = vld [vmem:[%s4699_s3 + $0x4b8] sm:$0xff] }
 0x14b   :  { %2089 = vmatpush2.bf16.msra.mxu0 %v3102_v35  ;;  %v521_v35 = vld [vmem:[%s4699_s3 + $0x5f8] sm:$0xff] }
 0x14c   :  { %2130 = vmatpush2.bf16.msra.mxu1 %v3230_v36  ;;  %2090 = vmatprep.subr.bf16.mxu0 %v3095_v37  ;;  %v3046_v36 = vcombine.low %v396_v24, %v400_v25  ;;  %v3174_v37 = vcombine.low %v524_v26, %v528_v27  ;;  %v3169_v39 = vcombine.high %v517_v34, %v521_v35  ;;  %v345_v24 = vld [vmem:[%s4699_s3 + $0x78] sm:$0xff] }
 0x14d   :  { %2131 = vmatprep.subr.bf16.mxu1 %v3223_v38  ;;  %v3041_v38 = vcombine.high %v389_v32, %v393_v33  ;;  %v469_v25 = vld [vmem:[%s4699_s3 + $0x458] sm:$0xff] }
 0x14e   :  { %v473_v26 = vld [vmem:[%s4699_s3 + $0x478] sm:$0xff] }
 0x14f   :  { %2091 = vmatpush2.bf16.msra.mxu0 %v3094_v43  ;;  %v509_v43 = vld [vmem:[%s4699_s3 + $0x598] sm:$0xff] }
 0x150   :  { %2132 = vmatpush2.bf16.msra.mxu1 %v3222_v47  ;;  %2092 = vmatprep.subr.bf16.mxu0 %v3087_v50  ;;  %v513_v47 = vld [vmem:[%s4699_s3 + $0x5b8] sm:$0xff]  ;;  %v3168_v50 = vcombine.low %v517_v34, %v521_v35 }
 0x151   :  { %2133 = vmatprep.subr.bf16.mxu1 %v3215_v51  ;;  %v3033_v51 = vcombine.high %v381_v40, %v385_v41  ;;  %v3161_v54 = vcombine.high %v509_v43, %v513_v47  ;;  %v337_v32 = vld [vmem:[%s4699_s3 + $0x38] sm:$0xff] }
 0x152   :  { %v461_v33 = vld [vmem:[%s4699_s3 + $0x418] sm:$0xff] }
 0x153   :  { %2093 = vmatpush2.bf16.msra.mxu0 %v3086_v56  ;;  %v505_v56 = vld [vmem:[%s4699_s3 + $0x578] sm:$0xff] }
 0x154   :  { %2134 = vmatpush2.bf16.msra.mxu1 %v3214_v57  ;;  %2094 = vmatprep.subr.bf16.mxu0 %v3079_v58  ;;  %v3032_v57 = vcombine.low %v381_v40, %v385_v41  ;;  %v3160_v58 = vcombine.low %v509_v43, %v513_v47  ;;  %v3153_v60 = vcombine.high %v501_v55, %v505_v56  ;;  %v465_v34 = vld [vmem:[%s4699_s3 + $0x438] sm:$0xff] }
 0x155   :  { %2135 = vmatprep.subr.bf16.mxu1 %v3207_v59  ;;  %v3025_v59 = vcombine.high %v373_v52, %v377_v53  ;;  %v457_v40 = vld [vmem:[%s4699_s3 + $0x3f8] sm:$0xff]  ;;  %v3112_v47 = vcombine.low %v461_v33, %v465_v34 }
 0x156   :  { %v581_v41 = vld [vmem:[%s4699_s3 + $0x7d8] sm:$0xff] }
 0x157   :  { %2095 = vmatpush2.bf16.msra.mxu0 %v3078_v1  ;;  %v3152_v1 = vcombine.low %v501_v55, %v505_v56  ;;  %v577_v55 = vld [vmem:[%s4699_s3 + $0x7b8] sm:$0xff] }
 0x158   :  { %2136 = vmatpush2.bf16.msra.mxu1 %v3206_v2  ;;  %2096 = vmatprep.subr.bf16.mxu0 %v3071_v3  ;;  %v3017_v2 = vcombine.high %v365_v61, %v369_v62  ;;  %v441_v61 = vld [vmem:[%s4699_s3 + $0x378] sm:$0xff] }
 0x159   :  { %2137 = vmatprep.subr.bf16.mxu1 %v3199_v4  ;;  %v357_v4 = vld [vmem:[%s4699_s3 + $0xd8] sm:$0xff] }
 0x15a   :  { %v3008_v19 = vcombine.low %v357_v4, %v361_v8  ;;  %v565_v62 = vld [vmem:[%s4699_s3 + $0x758] sm:$0xff] }
 0x15b   :  { %2097 = vmatpush2.bf16.msra.mxu0 %v3070_v12 }
 0x15c   :  { %2138 = vmatpush2.bf16.msra.mxu1 %v3198_v13  ;;  %2098 = vmatprep.subr.bf16.mxu0 %v3063_v14  ;;  %v3009_v13 = vcombine.high %v357_v4, %v361_v8  ;;  %v3137_v14 = vcombine.high %v485_v9, %v489_v10  ;;  %v433_v4 = vld [vmem:[%s4699_s3 + $0x338] sm:$0xff] }
 0x15d   :  { %2139 = vmatprep.subr.bf16.mxu1 %v3191_v15  ;;  %v349_v15 = vld [vmem:[%s4699_s3 + $0x98] sm:$0xff] }
 0x15e   :  { %v3000_v27 = vcombine.low %v349_v15, %v353_v16  ;;  %v557_v8 = vld [vmem:[%s4699_s3 + $0x718] sm:$0xff] }
 0x15f   :  { %2099 = vmatpush2.bf16.msra.mxu0 %v3062_v20  ;;  %v3136_v20 = vcombine.low %v485_v9, %v489_v10  ;;  %v561_v9 = vld [vmem:[%s4699_s3 + $0x738] sm:$0xff] }
 0x160   :  { %2140 = vmatpush2.bf16.msra.mxu1 %v3190_v21  ;;  %2100 = vmatprep.subr.bf16.mxu0 %v3055_v22  ;;  %v3001_v21 = vcombine.high %v349_v15, %v353_v16  ;;  %v3129_v22 = vcombine.high %v477_v17, %v481_v18  ;;  %v425_v15 = vld [vmem:[%s4699_s3 + $0x2f8] sm:$0xff] }
 0x161   :  { %2141 = vmatprep.subr.bf16.mxu1 %v3183_v23  ;;  %v341_v23 = vld [vmem:[%s4699_s3 + $0x58] sm:$0xff] }
 0x162   :  { %v2992_v35 = vcombine.low %v341_v23, %v345_v24  ;;  %v549_v16 = vld [vmem:[%s4699_s3 + $0x6d8] sm:$0xff] }
 0x163   :  { %2101 = vmatpush2.bf16.msra.mxu0 %v3054_v28  ;;  %v3128_v28 = vcombine.low %v477_v17, %v481_v18  ;;  %v553_v17 = vld [vmem:[%s4699_s3 + $0x6f8] sm:$0xff] }
 0x164   :  { %2142 = vmatpush2.bf16.msra.mxu1 %v3182_v29  ;;  %2102 = vmatprep.subr.bf16.mxu0 %v3047_v30  ;;  %v2993_v29 = vcombine.high %v341_v23, %v345_v24  ;;  %v3121_v30 = vcombine.high %v469_v25, %v473_v26  ;;  %v417_v23 = vld [vmem:[%s4699_s3 + $0x2b8] sm:$0xff] }
 0x165   :  { %2143 = vmatprep.subr.bf16.mxu1 %v3175_v31  ;;  %v333_v31 = vld [vmem:[%s4699_s3 + $0x18] sm:$0xff] }
 0x166   :  { %v2984_v43 = vcombine.low %v333_v31, %v337_v32  ;;  %v541_v24 = vld [vmem:[%s4699_s3 + $0x698] sm:$0xff] }
 0x167   :  { %2103 = vmatpush2.bf16.msra.mxu0 %v3046_v36  ;;  %v3120_v36 = vcombine.low %v469_v25, %v473_v26  ;;  %v545_v25 = vld [vmem:[%s4699_s3 + $0x6b8] sm:$0xff] }
 0x168   :  { %2144 = vmatpush2.bf16.msra.mxu1 %v3174_v37  ;;  %2154 = vmatprep.subr.bf16.mxu0 %v3041_v38  ;;  %v2985_v37 = vcombine.high %v333_v31, %v337_v32  ;;  %v3113_v38 = vcombine.high %v461_v33, %v465_v34  ;;  %v409_v31 = vld [vmem:[%s4699_s3 + $0x278] sm:$0xff] }
 0x169   :  { %2195 = vmatprep.subr.bf16.mxu1 %v3169_v39  ;;  %v453_v39 = vld [vmem:[%s4699_s3 + $0x3d8] sm:$0xff] }
 0x16a   :  { %2105 = vmatmul.mubr.bf16.vlgmr.msra.gmra.mxu0 %v3903_v7  ;;  %v3104_v56 = vcombine.low %v453_v39, %v457_v40  ;;  %v533_v32 = vld [vmem:[%s4699_s3 + $0x658] sm:$0xff] }
 0x16b   :  { %2146 = vmatmul.mubr.bf16.vlgmr.msra.gmra.mxu1 %v3888_v63  ;;  %2155 = vmatpush1.bf16.msra.mxu0 %v3040_v42  ;;  %v585_v42 = vld [vmem:[%s4699_s3 + $0x7f8] sm:$0xff] }
 0x16c   :  { %2186 = vmatprep.mubr.bf16.mxu0 %v3899_v5  ;;  %2196 = vmatpush1.bf16.msra.mxu1 %v3168_v50  ;;  %v493_v5 = vld [vmem:[%s4699_s3 + $0x518] sm:$0xff]  ;;  %v3105_v50 = vcombine.high %v453_v39, %v457_v40 }
 0x16d   :  { %2227 = vmatprep.mubr.bf16.mxu1 %v3901_v6  ;;  %2156 = vmatprep.subr.bf16.mxu0 %v3033_v51  ;;  %v3024_v6 = vcombine.low %v373_v52, %v377_v53  ;;  %v3145_v3 = vcombine.high %v493_v5, %v497_v0  ;;  %v3144_v12 = vcombine.low %v493_v5, %v497_v0  ;;  %v445_v52 = vld [vmem:[%s4699_s3 + $0x398] sm:$0xff] }
 0x16e   :  { %2197 = vmatprep.subr.bf16.mxu1 %v3161_v54  ;;  %v3233_v51 = vcombine.high %v581_v41, %v585_v42  ;;  %v449_v53 = vld [vmem:[%s4699_s3 + $0x3b8] sm:$0xff] }
 0x16f   :  { %2157 = vmatpush1.bf16.msra.mxu0 %v3032_v57  ;;  %v573_v54 = vld [vmem:[%s4699_s3 + $0x798] sm:$0xff]  ;;  %v3232_v57 = vcombine.low %v581_v41, %v585_v42  ;;  %v3096_v0 = vcombine.low %v445_v52, %v449_v53 }
 0x170   :  { %2198 = vmatpush1.bf16.msra.mxu1 %v3160_v58  ;;  %2158 = vmatprep.subr.bf16.mxu0 %v3025_v59  ;;  %v3097_v58 = vcombine.high %v445_v52, %v449_v53  ;;  %v3225_v59 = vcombine.high %v573_v54, %v577_v55  ;;  %v569_v5 = vld [vmem:[%s4699_s3 + $0x778] sm:$0xff] }
 0x171   :  { %2199 = vmatprep.subr.bf16.mxu1 %v3153_v60  ;;  %v437_v60 = vld [vmem:[%s4699_s3 + $0x358] sm:$0xff] }
 0x172   :  { %v3088_v10 = vcombine.low %v437_v60, %v441_v61  ;;  %v537_v33 = vld [vmem:[%s4699_s3 + $0x678] sm:$0xff] }
 0x173   :  { %2159 = vmatpush1.bf16.msra.mxu0 %v3024_v6  ;;  %v3224_v6 = vcombine.low %v573_v54, %v577_v55  ;;  %v401_v39 = vld [vmem:[%s4699_s3 + $0x238] sm:$0xff] }
 0x174   :  { %2200 = vmatpush1.bf16.msra.mxu1 %v3152_v1  ;;  %2160 = vmatprep.subr.bf16.mxu0 %v3017_v2  ;;  %v3089_v1 = vcombine.high %v437_v60, %v441_v61  ;;  %v3217_v2 = vcombine.high %v565_v62, %v569_v5  ;;  %v525_v40 = vld [vmem:[%s4699_s3 + $0x618] sm:$0xff]  ;;  %v3455_v60 = vld [vmem:[%s4701_s5 + $0xf0] sm:$0xff]  }
 0x175   :  { %2201 = vmatprep.subr.bf16.mxu1 %v3145_v3  ;;  %v429_v3 = vld [vmem:[%s4699_s3 + $0x318] sm:$0xff] }
 0x176   :  { %v3080_v18 = vcombine.low %v429_v3, %v433_v4  ;;  %v529_v41 = vld [vmem:[%s4699_s3 + $0x638] sm:$0xff] }
 0x177   :  { %2161 = vmatpush1.bf16.msra.mxu0 %v3016_v11  ;;  %v3216_v11 = vcombine.low %v565_v62, %v569_v5  ;;  %v3176_v52 = vcombine.low %v525_v40, %v529_v41  ;;  %v3437_v53 = vld [vmem:[%s4701_s5 + $0x78] sm:$0xff]   ;;  %v3440_v5 = vld [vmem:[%s4701_s5 + $0x30] sm:$0xff]  }
 0x178   :  { %2202 = vmatpush1.bf16.msra.mxu1 %v3144_v12  ;;  %2162 = vmatprep.subr.bf16.mxu0 %v3009_v13  ;;  %v3081_v12 = vcombine.high %v429_v3, %v433_v4  ;;  %v3209_v13 = vcombine.high %v557_v8, %v561_v9  ;;  %v3453_v54 = vld [vmem:[%s4701_s5 + $0xf8] sm:$0xff]  }
 0x179   :  { %2203 = vmatprep.subr.bf16.mxu1 %v3137_v14  ;;  %v421_v14 = vld [vmem:[%s4699_s3 + $0x2d8] sm:$0xff] }
 0x17a   :  { %v3072_v26 = vcombine.low %v421_v14, %v425_v15  ;;  %v3438_v55 = vld [vmem:[%s4701_s5 + $0x38] sm:$0xff]  }
 0x17b   :  { %2163 = vmatpush1.bf16.msra.mxu0 %v3008_v19  ;;  %v3208_v19 = vcombine.low %v557_v8, %v561_v9  ;;  %v3442_v8 = vld [vmem:[%s4701_s5 + $0x28] sm:$0xff]  }
 0x17c   :  { %2204 = vmatpush1.bf16.msra.mxu1 %v3136_v20  ;;  %2164 = vmatprep.subr.bf16.mxu0 %v3001_v21  ;;  %v3073_v20 = vcombine.high %v421_v14, %v425_v15  ;;  %v3201_v21 = vcombine.high %v549_v16, %v553_v17  ;;  %v3459_v14 = vld [vmem:[%s4701_s5 + $0xe0] sm:$0xff]  }
 0x17d   :  { %2205 = vmatprep.subr.bf16.mxu1 %v3129_v22  ;;  %v413_v22 = vld [vmem:[%s4699_s3 + $0x298] sm:$0xff] }
 0x17e   :  { %v3064_v34 = vcombine.low %v413_v22, %v417_v23 }
 0x17f   :  { %2165 = vmatpush1.bf16.msra.mxu0 %v3000_v27  ;;  %v3200_v27 = vcombine.low %v549_v16, %v553_v17  ;;  %v3444_v16 = vld [vmem:[%s4701_s5 + $0x20] sm:$0xff]   ;;  %v3445_v17 = vld [vmem:[%s4701_s5 + $0x58] sm:$0xff]  }
 0x180   :  { %2206 = vmatpush1.bf16.msra.mxu1 %v3128_v28  ;;  %2166 = vmatprep.subr.bf16.mxu0 %v2993_v29  ;;  %v3065_v28 = vcombine.high %v413_v22, %v417_v23  ;;  %v3193_v29 = vcombine.high %v541_v24, %v545_v25  ;;  %v3447_v22 = vld [vmem:[%s4701_s5 + $0x50] sm:$0xff]   ;;  %v3462_v23 = vld [vmem:[%s4701_s5 + $0x98] sm:$0xff]  }
 0x181   :  { %2207 = vmatprep.subr.bf16.mxu1 %v3121_v30  ;;  %v405_v30 = vld [vmem:[%s4699_s3 + $0x258] sm:$0xff] }
 0x182   :  { %v3056_v42 = vcombine.low %v405_v30, %v409_v31 }
 0x183   :  { %2167 = vmatpush1.bf16.msra.mxu0 %v2992_v35  ;;  %v3192_v35 = vcombine.low %v541_v24, %v545_v25  ;;  %v3463_v24 = vld [vmem:[%s4701_s5 + $0xd0] sm:$0xff]  }
 0x184   :  { %2208 = vmatpush1.bf16.msra.mxu1 %v3120_v36  ;;  %2168 = vmatprep.subr.bf16.mxu0 %v2985_v37  ;;  %v3057_v36 = vcombine.high %v405_v30, %v409_v31  ;;  %v3185_v37 = vcombine.high %v533_v32, %v537_v33  ;;  %v3451_v31 = vld [vmem:[%s4701_s5 + $0x40] sm:$0xff]  }
 0x185   :  { %2209 = vmatprep.subr.bf16.mxu1 %v3113_v38  ;;  %v397_v38 = vld [vmem:[%s4699_s3 + $0x218] sm:$0xff] }
 0x187   :  { %2169 = vmatpush1.bf16.msra.mxu0 %v2984_v43  ;;  %v3184_v43 = vcombine.low %v533_v32, %v537_v33  ;;  %v3466_v32 = vld [vmem:[%s4701_s5 + $0x88] sm:$0xff]   ;;  %v3467_v33 = vld [vmem:[%s4701_s5 + $0xc0] sm:$0xff]  }
 0x188   :  { %2210 = vmatpush1.bf16.msra.mxu1 %v3112_v47  ;;  %2170 = vmatprep.subr.bf16.mxu0 %v3105_v50  ;;  %v3049_v47 = vcombine.high %v397_v38, %v401_v39  ;;  %v3177_v50 = vcombine.high %v525_v40, %v529_v41  ;;  %v3471_v41 = vld [vmem:[%s4701_s5 + $0x170] sm:$0xff]  }
 0x189   :  { %2211 = vmatprep.subr.bf16.mxu1 %v3233_v51  ;;  %v3048_v51 = vcombine.low %v397_v38, %v401_v39  ;;  %v3485_v38 = vld [vmem:[%s4701_s5 + $0x1f8] sm:$0xff]  }
 0x18a   :  { %v3470_v39 = vld [vmem:[%s4701_s5 + $0x138] sm:$0xff]  }
 0x18b   :  { %2171 = vmatpush2.bf16.msra.mxu0 %v3104_v56  ;;  %v4483_v56 = vld [vmem:[%s4700_s4] sm:$0xff] }
 0x18c   :  { %2212 = vmatpush2.bf16.msra.mxu1 %v3232_v57  ;;  %2172 = vmatprep.subr.bf16.mxu0 %v3097_v58  ;;  %v3439_v57 = vld [vmem:[%s4701_s5 + $0x70] sm:$0xff]   ;;  %v3454_v58 = vld [vmem:[%s4701_s5 + $0xb8] sm:$0xff]  }
 0x18d   :  { %2213 = vmatprep.subr.bf16.mxu1 %v3225_v59  ;;  %v595_v59 = vrot.slane %v4483_v56, %v70_v48  ;;  %v3441_v48 = vld [vmem:[%s4701_s5 + $0x68] sm:$0xff]  }
 0x18f   :  { %2173 = vmatpush2.bf16.msra.mxu0 %v3096_v0 }
 0x190   :  { %2214 = vmatpush2.bf16.msra.mxu1 %v3224_v6  ;;  %2174 = vmatprep.subr.bf16.mxu0 %v3089_v1 }
 0x191   :  { %2215 = vmatprep.subr.bf16.mxu1 %v3217_v2 }
 0x193   :  { %2175 = vmatpush2.bf16.msra.mxu0 %v3088_v10 }
 0x194   :  { %2216 = vmatpush2.bf16.msra.mxu1 %v3216_v11  ;;  %2176 = vmatprep.subr.bf16.mxu0 %v3081_v12  ;;  %v3443_v11 = vld [vmem:[%s4701_s5 + $0x60] sm:$0xff]   ;;  %v3458_v12 = vld [vmem:[%s4701_s5 + $0xa8] sm:$0xff]  }
 0x195   :  { %2217 = vmatprep.subr.bf16.mxu1 %v3209_v13 }
 0x197   :  { %2177 = vmatpush2.bf16.msra.mxu0 %v3080_v18  ;;  %v3460_v18 = vld [vmem:[%s4701_s5 + $0xa0] sm:$0xff]  }
 0x198   :  { %2218 = vmatpush2.bf16.msra.mxu1 %v3208_v19  ;;  %2178 = vmatprep.subr.bf16.mxu0 %v3073_v20  ;;  %v3461_v19 = vld [vmem:[%s4701_s5 + $0xd8] sm:$0xff]  }
 0x199   :  { %2219 = vmatprep.subr.bf16.mxu1 %v3201_v21  ;;  %v3446_v20 = vld [vmem:[%s4701_s5 + $0x18] sm:$0xff]   ;;  %v591_v21 = vrot.slane %v4483_v56, %v66_v46  ;;  %v3448_v46 = vld [vmem:[%s4701_s5 + $0x10] sm:$0xff]  }
 0x19b   :  { %2179 = vmatpush2.bf16.msra.mxu0 %v3072_v26  ;;  %v3449_v26 = vld [vmem:[%s4701_s5 + $0x48] sm:$0xff]  }
 0x19c   :  { %2220 = vmatpush2.bf16.msra.mxu1 %v3200_v27  ;;  %2180 = vmatprep.subr.bf16.mxu0 %v3065_v28  ;;  %v3464_v27 = vld [vmem:[%s4701_s5 + $0x90] sm:$0xff]   ;;  %v3465_v28 = vld [vmem:[%s4701_s5 + $0xc8] sm:$0xff]  }
 0x19d   :  { %2221 = vmatprep.subr.bf16.mxu1 %v3193_v29  ;;  %v3450_v29 = vld [vmem:[%s4701_s5 + $0x8] sm:$0xff]  }
 0x19f   :  { %2181 = vmatpush2.bf16.msra.mxu0 %v3064_v34  ;;  %v3452_v34 = vld [vmem:[%s4701_s5] sm:$0xff]  }
 0x1a0   :  { %2222 = vmatpush2.bf16.msra.mxu1 %v3192_v35  ;;  %2182 = vmatprep.subr.bf16.mxu0 %v3057_v36  ;;  %v3468_v36 = vld [vmem:[%s4701_s5 + $0x80] sm:$0xff]  }
 0x1a1   :  { %2223 = vmatprep.subr.bf16.mxu1 %v3185_v37  ;;  %v3469_v37 = vld [vmem:[%s4701_s5 + $0x178] sm:$0xff]  }
 0x1a3   :  { %2183 = vmatpush2.bf16.msra.mxu0 %v3056_v42  ;;  %v3472_v42 = vld [vmem:[%s4701_s5 + $0x130] sm:$0xff]  }
 0x1a4   :  { %2224 = vmatpush2.bf16.msra.mxu1 %v3184_v43  ;;  %2184 = vmatprep.subr.bf16.mxu0 %v3049_v47  ;;  %v3473_v43 = vld [vmem:[%s4701_s5 + $0x168] sm:$0xff]  }
 0x1a5   :  { %2225 = vmatprep.subr.bf16.mxu1 %v3177_v50  ;;  %v3474_v47 = vld [vmem:[%s4701_s5 + $0x128] sm:$0xff]   ;;  %v3475_v50 = vld [vmem:[%s4701_s5 + $0x160] sm:$0xff]  }
 0x1a7   :  { %2185 = vmatpush2.bf16.msra.mxu0 %v3048_v51  ;;  %v3476_v51 = vld [vmem:[%s4701_s5 + $0x120] sm:$0xff]  }
 0x1a8   :  { %2226 = vmatpush2.bf16.msra.mxu1 %v3176_v52  ;;  %3299 = vmatprep.subr.bf16.mxu0 %v3437_v53  ;;  %v3477_v52 = vld [vmem:[%s4701_s5 + $0x158] sm:$0xff]  }
 0x1a9   :  { %3321 = vmatprep.subr.bf16.mxu1 %v3453_v54  ;;  %v3478_v53 = vld [vmem:[%s4701_s5 + $0x118] sm:$0xff]   ;;  %v3479_v54 = vld [vmem:[%s4701_s5 + $0x150] sm:$0xff]  }
 0x1aa   :  { %2187 = vmatmul.mubr.bf16.vlgmr.msra.gmra.mxu0 %v3903_v7  ;;  %v1942_v61 = vpop.f32.mrf.mxu0  ;;  %v1983_v62 = vpop.f32.mrf.mxu1  ;;  %v3456_v7 = vld [vmem:[%s4701_s5 + $0xb0] sm:$0xff]  }
 0x1ab   :  { %2228 = vmatmul.mubr.bf16.vlgmr.msra.gmra.mxu1 %v3888_v63  ;;  %3300 = vmatpush3.bf16.msra.mxu0 %v3438_v55  ;;  %v3457_v63 = vld [vmem:[%s4701_s5 + $0xe8] sm:$0xff]   ;;  %v1943_v25 = vadd.f32 %v1942_v61, %v591_v21  ;;  %v3480_v55 = vld [vmem:[%s4701_s5 + $0x110] sm:$0xff]   ;;  %v599_v61 = vrot.slane %v4483_v56, %v74_v45 }
 0x1ac   :  { %v1944_v0 = vpop.f32.mrf.mxu0  ;;  %v1985_v6 = vpop.f32.mrf.mxu1  ;;  %3301 = vmatprep.subr.bf16.mxu0 %v3439_v57  ;;  %3322 = vmatpush3.bf16.msra.mxu1 %v3454_v58  ;;  %v3481_v57 = vld [vmem:[%s4701_s5 + $0x148] sm:$0xff]   ;;  %v3495_v21 = vld [vmem:[%s4701_s5 + $0x1d0] sm:$0xff]  }
 0x1ad   :  { %v1945_v1 = vadd.f32 %v1944_v0, %v595_v59  ;;  %3323 = vmatprep.subr.bf16.mxu1 %v3455_v60  ;;  %v1984_v30 = vadd.f32 %v1983_v62, %v1943_v25  ;;  %v3482_v58 = vld [vmem:[%s4701_s5 + $0x108] sm:$0xff]   ;;  %v3483_v59 = vld [vmem:[%s4701_s5 + $0x140] sm:$0xff]   ;;  %v603_v62 = vrot.slane %v4483_v56, %v78_v49 }
 0x1ae   :  { %v1946_v2 = vpop.f32.mrf.mxu0  ;;  %v1987_v3 = vpop.f32.mrf.mxu1  ;;  %v3484_v60 = vld [vmem:[%s4701_s5 + $0x100] sm:$0xff]  }
 0x1af   :  { %v1986_v4 = vadd.f32 %v1985_v6, %v1945_v1  ;;  %3302 = vmatpush3.bf16.msra.mxu0 %v3440_v5  ;;  %v2236_v35 = vmax.f32 %v1984_v30, 0.0  ;;  %v3500_v25 = vld [vmem:[%s4701_s5 + $0x180] sm:$0xff]  }
 0x1b0   :  { %v1947_v9 = vpop.f32.mrf.mxu0  ;;  %v1988_v10 = vpop.f32.mrf.mxu1  ;;  %3303 = vmatprep.subr.bf16.mxu0 %v3441_v48  ;;  %3324 = vmatpush3.bf16.msra.mxu1 %v3456_v7 }
 0x1b1   :  { %v2237_v13 = vmax.f32 %v1986_v4, 0.0  ;;  %3325 = vmatprep.subr.bf16.mxu1 %v3457_v63  ;;  %v2244_v40 = vpack.c.bf16 %v2236_v35, %v2236_v35 }
 0x1b3   :  { %v2245_v15 = vpack.c.bf16 %v2237_v13, %v2237_v13  ;;  %3304 = vmatpush3.bf16.msra.mxu0 %v3442_v8  ;;  %v3487_v13 = vld [vmem:[%s4701_s5 + $0x1f0] sm:$0xff]  }
 0x1b4   :  { %3305 = vmatprep.subr.bf16.mxu0 %v3443_v11  ;;  %3326 = vmatpush3.bf16.msra.mxu1 %v3458_v12  ;;  %v3486_v12 = vld [vmem:[%s4701_s5 + $0x1b8] sm:$0xff]  }
 0x1b5   :  { %2803 = vmatprep.mubr.bf16.mxu0 %v2245_v15  ;;  %3327 = vmatprep.subr.bf16.mxu1 %v3459_v14  ;;  %v3488_v14 = vld [vmem:[%s4701_s5 + $0x1b0] sm:$0xff]   ;;  %v3489_v15 = vld [vmem:[%s4701_s5 + $0x1e8] sm:$0xff]  }
 0x1b7   :  { %3306 = vmatpush3.bf16.msra.mxu0 %v3444_v16  ;;  %v3490_v16 = vld [vmem:[%s4701_s5 + $0x1a8] sm:$0xff]  }
 0x1b8   :  { %3307 = vmatprep.subr.bf16.mxu0 %v3445_v17  ;;  %3328 = vmatpush3.bf16.msra.mxu1 %v3460_v18  ;;  %v3491_v17 = vld [vmem:[%s4701_s5 + $0x1e0] sm:$0xff]  }
 0x1b9   :  { %3329 = vmatprep.subr.bf16.mxu1 %v3461_v19  ;;  %v3492_v18 = vld [vmem:[%s4701_s5 + $0x1a0] sm:$0xff]   ;;  %v3493_v19 = vld [vmem:[%s4701_s5 + $0x1d8] sm:$0xff]  }
 0x1bb   :  { %3308 = vmatpush3.bf16.msra.mxu0 %v3446_v20  ;;  %v3494_v20 = vld [vmem:[%s4701_s5 + $0x198] sm:$0xff]  }
 0x1bc   :  { %3309 = vmatprep.subr.bf16.mxu0 %v3447_v22  ;;  %3330 = vmatpush3.bf16.msra.mxu1 %v3462_v23  ;;  %v3496_v22 = vld [vmem:[%s4701_s5 + $0x190] sm:$0xff]   ;;  %v3497_v23 = vld [vmem:[%s4701_s5 + $0x1c8] sm:$0xff]  }
 0x1bd   :  { %3331 = vmatprep.subr.bf16.mxu1 %v3463_v24  ;;  %v3498_v24 = vld [vmem:[%s4701_s5 + $0x188] sm:$0xff]  }
 0x1bf   :  { %3310 = vmatpush3.bf16.msra.mxu0 %v3448_v46  ;;  %v3499_v46 = vld [vmem:[%s4701_s5 + $0x1c0] sm:$0xff]  }
 0x1c0   :  { %3311 = vmatprep.subr.bf16.mxu0 %v3449_v26  ;;  %3332 = vmatpush3.bf16.msra.mxu1 %v3464_v27  ;;  %v606_v26 = vsub.s32 4, %v3868_v44  ;;  %v610_v27 = vsub.s32 5, %v3868_v44 }
 0x1c1   :  { %3333 = vmatprep.subr.bf16.mxu1 %v3465_v28 }
 0x1c2   :  { %v607_v28 = vrot.slane %v4483_v56, %v606_v26 }
 0x1c3   :  { %3312 = vmatpush3.bf16.msra.mxu0 %v3450_v29  ;;  %v611_v29 = vrot.slane %v4483_v56, %v610_v27 }
 0x1c4   :  { %3313 = vmatprep.subr.bf16.mxu0 %v3451_v31  ;;  %3334 = vmatpush3.bf16.msra.mxu1 %v3466_v32 }
 0x1c5   :  { %3335 = vmatprep.subr.bf16.mxu1 %v3467_v33 }
 0x1c7   :  { %3314 = vmatpush3.bf16.msra.mxu0 %v3452_v34 }
 0x1c8   :  { %3336 = vmatpush3.bf16.msra.mxu1 %v3468_v36  ;;  %3343 = vmatprep.subr.bf16.mxu0 %v3469_v37 }
 0x1c9   :  { %3365 = vmatprep.subr.bf16.mxu1 %v3485_v38 }
 0x1ca   :  { %2804 = vmatmul.mubr.bf16.vlgmr.msra.gmra.mxu0 %v2244_v40 }
 0x1cb   :  { %3344 = vmatpush3.bf16.msra.mxu0 %v3470_v39 }
 0x1cc   :  { %3345 = vmatprep.subr.bf16.mxu0 %v3471_v41 }
 0x1cf   :  { %3346 = vmatpush3.bf16.msra.mxu0 %v3472_v42 }
 0x1d0   :  { %3347 = vmatprep.subr.bf16.mxu0 %v3473_v43 }
 0x1d3   :  { %3348 = vmatpush3.bf16.msra.mxu0 %v3474_v47 }
 0x1d4   :  { %3349 = vmatprep.subr.bf16.mxu0 %v3475_v50 }
 0x1d7   :  { %3350 = vmatpush3.bf16.msra.mxu0 %v3476_v51  ;;  %v614_v51 = vsub.s32 6, %v3868_v44 }
 0x1d8   :  { %3351 = vmatprep.subr.bf16.mxu0 %v3477_v52  ;;  %v618_v52 = vsub.s32 7, %v3868_v44 }
 0x1db   :  { %3352 = vmatpush3.bf16.msra.mxu0 %v3478_v53  ;;  %v615_v53 = vrot.slane %v4483_v56, %v614_v51 }
 0x1dc   :  { %3353 = vmatprep.subr.bf16.mxu0 %v3479_v54  ;;  %v619_v54 = vrot.slane %v4483_v56, %v618_v52 }
 0x1df   :  { %3354 = vmatpush3.bf16.msra.mxu0 %v3480_v55 }
 0x1e0   :  { %3355 = vmatprep.subr.bf16.mxu0 %v3481_v57 }
 0x1e3   :  { %3356 = vmatpush3.bf16.msra.mxu0 %v3482_v58 }
 0x1e4   :  { %3357 = vmatprep.subr.bf16.mxu0 %v3483_v59 }
 0x1e7   :  { %3358 = vmatpush3.bf16.msra.mxu0 %v3484_v60 }
 0x1ea   :  { %v2024_v5 = vpop.f32.mrf.mxu0  ;;  %v2065_v0 = vpop.f32.mrf.mxu1 }
 0x1eb   :  { %v2025_v6 = vadd.f32 %v2024_v5, %v599_v61 }
 0x1ec   :  { %v2026_v48 = vpop.f32.mrf.mxu0  ;;  %v2067_v7 = vpop.f32.mrf.mxu1 }
 0x1ed   :  { %v2066_v1 = vadd.f32 %v2065_v0, %v2025_v6  ;;  %v2027_v63 = vadd.f32 %v2026_v48, %v603_v62 }
 0x1ee   :  { %v2028_v2 = vpop.f32.mrf.mxu0  ;;  %v2069_v3 = vpop.f32.mrf.mxu1 }
 0x1ef   :  { %v2068_v4 = vadd.f32 %v2067_v7, %v2027_v63  ;;  %v2238_v8 = vmax.f32 %v2066_v1, 0.0 }
 0x1f0   :  { %v2029_v9 = vpop.f32.mrf.mxu0  ;;  %v2070_v10 = vpop.f32.mrf.mxu1 }
 0x1f1   :  { %v2239_v11 = vmax.f32 %v2068_v4, 0.0  ;;  %v2246_v49 = vpack.c.bf16 %v2238_v8, %v2238_v8  ;;  %v3234_v10 = vld [vmem:[%s4702_s6] ss:$0 sm:$0xff]  ;;  %s3501_s6 = scalar_lea.vmem %s2939_s0, 128 }
 0x1f2   :  { %p3502_p0 = scmp.ne.s32.totalorder %s2939_s0, %s3501_s6  ;;  %p3507_p2 = scmp.lt.s32.totalorder %s3501_s6, %s3501_s6 }
 0x1f3   :  { %v2247_v45 = vpack.c.bf16 %v2239_v11, %v2239_v11 }
 0x1f4   :  { %p3508_p3 = por %p3507_p2, %p3506_p1 }
 0x1f5   :  { %2843 = vmatprep.mubr.bf16.mxu1 %v2247_v45 }
 0x1f6   :  { %2844 = vmatmul.mubr.bf16.vlgmr.msra.gmra.mxu1 %v2246_v49  ;;  %p3509_p4 = pnand %p3508_p3, %p3502_p0 }
 0x1f7   :  { %3366 = vmatpush3.bf16.msra.mxu1 %v3486_v12 }
 0x1f8   :  { %3367 = vmatprep.subr.bf16.mxu1 %v3487_v13 }
 0x1fb   :  { %3368 = vmatpush3.bf16.msra.mxu1 %v3488_v14 }
 0x1fc   :  { %3369 = vmatprep.subr.bf16.mxu1 %v3489_v15 }
 0x1ff   :  { %3370 = vmatpush3.bf16.msra.mxu1 %v3490_v16 }
 0x200   :  { %3371 = vmatprep.subr.bf16.mxu1 %v3491_v17 }
 0x203   :  { %3372 = vmatpush3.bf16.msra.mxu1 %v3492_v18 }
 0x204   :  { %3373 = vmatprep.subr.bf16.mxu1 %v3493_v19 }
 0x207   :  { %3374 = vmatpush3.bf16.msra.mxu1 %v3494_v20 }
 0x208   :  { %3375 = vmatprep.subr.bf16.mxu1 %v3495_v21 }
 0x20b   :  { %3376 = vmatpush3.bf16.msra.mxu1 %v3496_v22 }
 0x20c   :  { %3377 = vmatprep.subr.bf16.mxu1 %v3497_v23 }
 0x20f   :  { %3378 = vmatpush3.bf16.msra.mxu1 %v3498_v24 }
 0x210   :  { %3379 = vmatprep.subr.bf16.mxu1 %v3499_v46 }
 0x213   :  { %3380 = vmatpush3.bf16.msra.mxu1 %v3500_v25 }
 0x22a   :  { %v2106_v30 = vpop.f32.mrf.mxu0 }
 0x22b   :  { %v2107_v31 = vadd.f32 %v2106_v30, %v607_v28  ;;  %v2147_v32 = vpop.f32.mrf.mxu1 }
 0x22c   :  { %v2108_v33 = vpop.f32.mrf.mxu0 }
 0x22d   :  { %v2148_v34 = vadd.f32 %v2147_v32, %v2107_v31  ;;  %v2109_v35 = vadd.f32 %v2108_v33, %v611_v29  ;;  %v2149_v36 = vpop.f32.mrf.mxu1 }
 0x22e   :  { %v2110_v37 = vpop.f32.mrf.mxu0 }
 0x22f   :  { %v2150_v38 = vadd.f32 %v2149_v36, %v2109_v35  ;;  %v2151_v39 = vpop.f32.mrf.mxu1  ;;  %v2240_v40 = vmax.f32 %v2148_v34, 0.0 }
 0x230   :  { %v2111_v41 = vpop.f32.mrf.mxu0 }
 0x231   :  { %v2241_v42 = vmax.f32 %v2150_v38, 0.0  ;;  %v2152_v43 = vpop.f32.mrf.mxu1  ;;  %v2248_v50 = vpack.c.bf16 %v2240_v40, %v2240_v40 }
 0x233   :  { %v2249_v47 = vpack.c.bf16 %v2241_v42, %v2241_v42 }
 0x235   :  { %2883 = vmatprep.mubr.bf16.mxu0 %v2249_v47 }
 0x236   :  { %2884 = vmatmul.mubr.bf16.vlgmr.msra.gmra.mxu0 %v2248_v50 }
 0x26a   :  { %v2188_v55 = vpop.f32.mrf.mxu0 }
 0x26b   :  { %v2189_v57 = vadd.f32 %v2188_v55, %v615_v53  ;;  %v2229_v58 = vpop.f32.mrf.mxu1 }
 0x26c   :  { %v2190_v59 = vpop.f32.mrf.mxu0 }
 0x26d   :  { %v2230_v60 = vadd.f32 %v2229_v58, %v2189_v57  ;;  %v2191_v61 = vadd.f32 %v2190_v59, %v619_v54  ;;  %v2231_v62 = vpop.f32.mrf.mxu1 }
 0x26e   :  { %v2192_v5 = vpop.f32.mrf.mxu0 }
 0x26f   :  { %v2232_v0 = vadd.f32 %v2231_v62, %v2191_v61  ;;  %v2233_v6 = vpop.f32.mrf.mxu1  ;;  %v2242_v48 = vmax.f32 %v2230_v60, 0.0 }
 0x270   :  { %v2193_v7 = vpop.f32.mrf.mxu0 }
 0x271   :  { %v2243_v1 = vmax.f32 %v2232_v0, 0.0  ;;  %v2234_v63 = vpop.f32.mrf.mxu1  ;;  %v2250_v44 = vpack.c.bf16 %v2242_v48, %v2242_v48 }
 0x273   :  { %v2251_v2 = vpack.c.bf16 %v2243_v1, %v2243_v1 }
 0x275   :  { %2923 = vmatprep.mubr.bf16.mxu1 %v2251_v2 }
 0x276   :  { %2924 = vmatmul.mubr.bf16.vlgmr.msra.gmra.mxu1 %v2250_v44 }
 0x28a   :  { %v3315_v3 = vpop.f32.mrf.mxu0 }
 0x28c   :  { %v3316_v56 = vpop.f32.mrf.mxu0 }
 0x28d   :  { %v3317_v4 = vadd.f32 %v3316_v56, %v3315_v3 }
 0x28e   :  { %v3318_v8 = vpop.f32.mrf.mxu0 }
 0x28f   :  { %v2806_v12 = vadd.f32 %v3317_v4, %v3234_v10 }
 0x290   :  { %v3319_v9 = vpop.f32.mrf.mxu0 }
 0x2b6   :  { %v3337_v11 = vpop.f32.mrf.mxu1 }
 0x2b8   :  { %v3338_v45 = vpop.f32.mrf.mxu1 }
 0x2b9   :  { %v3339_v49 = vadd.f32 %v3338_v45, %v3337_v11 }
 0x2ba   :  { %v3340_v13 = vpop.f32.mrf.mxu1 }
 0x2bb   :  { %v2846_v14 = vadd.f32 %v3339_v49, %v2806_v12 }
 0x2bc   :  { %v3341_v15 = vpop.f32.mrf.mxu1 }
 0x2f6   :  { %v3359_v16 = vpop.f32.mrf.mxu0 }
 0x2f8   :  { %v3360_v17 = vpop.f32.mrf.mxu0 }
 0x2f9   :  { %v3361_v18 = vadd.f32 %v3360_v17, %v3359_v16 }
 0x2fa   :  { %v3362_v19 = vpop.f32.mrf.mxu0 }
 0x2fb   :  { %v2886_v20 = vadd.f32 %v3361_v18, %v2846_v14 }
 0x2fc   :  { %v3363_v21 = vpop.f32.mrf.mxu0 }
 0x336   :  { %v3381_v22 = vpop.f32.mrf.mxu1 }
 0x338   :  { %v3382_v23 = vpop.f32.mrf.mxu1 }
 0x339   :  { %v3383_v24 = vadd.f32 %v3382_v23, %v3381_v22 }
 0x33a   :  { %v3384_v46 = vpop.f32.mrf.mxu1 }
 0x33b   :  { %v2926_v25 = vadd.f32 %v3383_v24, %v2886_v20 }
 0x33c   :  { %v3385_v26 = vpop.f32.mrf.mxu1 }
 0x33d   :  { %2931 = vst [vmem:[#allocation2] sm:$0xff] %v2926_v25 }
 0x33e   :  { %3512 = shalt.err (!%p3509_p4)
}
 0x33f   :  { %2941 = dma.vmem_to_hbm [thread:$0]  %s2939_s0, 128, %s4703_s7, [#allocation3]  }
 0x340   :  { %3521 = dma.done.wait [#allocation3], 128  }
 0x341   :  { %3522 = vsyncadd [#allocation3], 4294967168 }
 0x342   :  { %2945 = vsyncpa [#allocation3], 1 }

</bundles_post_ra>
